<compile_context>
chip_gen: v7x
topology: tpu7x:2x2x1
jax: 0.10.0
libtpu: 0.0.40
codegen_flags: <defaults>
</compile_context>

<pallas_src>
import math
import functools

import numpy as np
import jax
import jax.numpy as jnp
from jax.experimental import pallas as pl
from jax.experimental.pallas import tpu as pltpu

_MB = 1024 * 1024


# --------------------------------------------------------------------------
# Module hyper-parameter helpers (ported verbatim from the PyTorch source)
# --------------------------------------------------------------------------
def estimate_levels(codebook_size: int):
    levels = {2 ** 4: [4, 4], 2 ** 8: [8, 6, 5], 2 ** 10: [8, 5, 5, 5],
              2 ** 11: [8, 7, 6, 6], 2 ** 12: [7, 5, 5, 5, 5],
              2 ** 14: [8, 8, 8, 6, 5], 2 ** 16: [8, 8, 8, 5, 5, 5]}
    if codebook_size in levels:
        return levels[codebook_size]
    raise ValueError("Codebook size not supported.")


def positional_encoding_table(max_len: int, d_model: int) -> jnp.ndarray:
    """pe buffer of PositionalEncoding: shape (max_len, 1, d_model)."""
    position = np.arange(max_len)[:, None].astype(np.float64)
    div_term = np.exp(np.arange(0, d_model, 2).astype(np.float64)
                      * (-math.log(10000.0) / d_model))
    pe = np.zeros((max_len, 1, d_model), np.float32)
    pe[:, 0, 0::2] = np.sin(position * div_term)
    pe[:, 0, 1::2] = np.cos(position * div_term)
    return jnp.asarray(pe)


# --------------------------------------------------------------------------
# Small helpers
# --------------------------------------------------------------------------
def _compiler_params(need_bytes: int) -> pltpu.CompilerParams:
    # v7x has 64 MiB VMEM per TC (32 MiB default scoped limit); keep an explicit
    # budget with headroom, capped so it also fits v7x.
    limit = int(min(max(32 * _MB, 4 * need_bytes), 48 * _MB))
    return pltpu.CompilerParams(dimension_semantics=("parallel",),
                                vmem_limit_bytes=limit)


def _layernorm_f32(x, gamma, beta, eps):
    mu = jnp.mean(x, axis=-1, keepdims=True)
    xc = x - mu
    var = jnp.mean(xc * xc, axis=-1, keepdims=True)
    return xc * jax.lax.rsqrt(var + eps) * gamma + beta


# --------------------------------------------------------------------------
# Kernel 1: enc_in Linear(bias=False) fused with PositionalEncoding add
# --------------------------------------------------------------------------
def _embed_pe_kernel(x_ref, w_ref, pe_ref, o_ref):
    x = x_ref[0].astype(jnp.bfloat16)                       # (S, P)
    y = jnp.dot(x, w_ref[...], preferred_element_type=jnp.float32)
    o_ref[0] = (y + pe_ref[0]).astype(o_ref.dtype)          # PE broadcast over seq


def pallas_embed_pe(x3d, w_bf16, pe_b):
    B, S, P = x3d.shape
    H = w_bf16.shape[1]
    need = (S * P + S * H) * 4 * 2 + P * H * 2 + H * 4
    return pl.pallas_call(
        _embed_pe_kernel,
        out_shape=jax.ShapeDtypeStruct((B, S, H), jnp.float32),
        grid=(B,),
        in_specs=[pl.BlockSpec((1, S, P), lambda b: (b, 0, 0)),
                  pl.BlockSpec((P, H), lambda b: (0, 0)),
                  pl.BlockSpec((1, 1, H), lambda b: (b, 0, 0))],
        out_specs=pl.BlockSpec((1, S, H), lambda b: (b, 0, 0)),
        compiler_params=_compiler_params(need),
    )(x3d, w_bf16, pe_b)


# --------------------------------------------------------------------------
# Kernel 2: one fully fused TransformerEncoderLayer (post-LN, relu, batch_first)
# --------------------------------------------------------------------------
def _tx_layer_kernel(x_ref, wqkv_ref, bqkv_ref, wo_ref, bo_ref,
                     g1_ref, be1_ref, w1_ref, bf1_ref, w2_ref, bf2_ref,
                     g2_ref, be2_ref, o_ref, *, nhead, eps):
    x = x_ref[0]                                            # (S, H) f32
    S, H = x.shape
    dh = H // nhead
    scale = 1.0 / math.sqrt(dh)

    # ---- multi-head self-attention: all heads in this grid step, in VMEM ----
    qkv = jnp.dot(x.astype(jnp.bfloat16), wqkv_ref[...],
                  preferred_element_type=jnp.float32) + bqkv_ref[...]   # (S, 3H)
    q, k, v = jnp.split(qkv, 3, axis=-1)
    head_outs = []
    for h in range(nhead):                                  # static unroll
        sl = slice(h * dh, (h + 1) * dh)
        qh = q[:, sl].astype(jnp.bfloat16)
        kh = k[:, sl].astype(jnp.bfloat16)
        vh = v[:, sl].astype(jnp.bfloat16)
        s = jnp.einsum("qd,kd->qk", qh, kh,
                       preferred_element_type=jnp.float32) * scale
        m = jnp.max(s, axis=-1, keepdims=True)
        p = jnp.exp(s - m)
        p = p * pl.reciprocal(jnp.sum(p, axis=-1, keepdims=True), approx=True)
        head_outs.append(jnp.dot(p.astype(jnp.bfloat16), vh,
                                 preferred_element_type=jnp.float32))
    attn = jnp.concatenate(head_outs, axis=-1)              # (S, H)
    attn = jnp.dot(attn.astype(jnp.bfloat16), wo_ref[...],
                   preferred_element_type=jnp.float32) + bo_ref[...]

    # ---- residual + LayerNorm 1 (f32 VPU math) ----
    h1 = _layernorm_f32(x + attn, g1_ref[...], be1_ref[...], eps)

    # ---- feed-forward (relu) ----
    f = jnp.dot(h1.astype(jnp.bfloat16), w1_ref[...],
                preferred_element_type=jnp.float32) + bf1_ref[...]
    f = jnp.maximum(f, 0.0)
    f = jnp.dot(f.astype(jnp.bfloat16), w2_ref[...],
                preferred_element_type=jnp.float32) + bf2_ref[...]

    # ---- residual + LayerNorm 2 ----
    o_ref[0] = _layernorm_f32(h1 + f, g2_ref[...], be2_ref[...], eps
                              ).astype(o_ref.dtype)


def pallas_transformer_layer(x, p, *, nhead):
    B, S, H = x.shape
    ff = p["ff1"]["w"].shape[1]
    row = lambda a: a.reshape(1, -1)
    vspec = lambda n: pl.BlockSpec((1, n), lambda b: (0, 0))

    w_bytes = (H * 3 * H + H * H + H * ff + ff * H) * 2 \
        + (3 * H + H + ff + H + 4 * H) * 4
    need = w_bytes + 2 * (2 * S * H) * 4 + (S * 3 * H + S * ff) * 4
    flops = B * (2 * S * H * 3 * H + 2 * S * H * H + 4 * S * S * H
                 + 4 * S * H * ff)
    ce = pl.CostEstimate(flops=flops,
                         transcendentals=B * (nhead * S * S + 2 * S),
                         bytes_accessed=B * S * H * 4 * 2 + w_bytes)

    return pl.pallas_call(
        functools.partial(_tx_layer_kernel, nhead=nhead, eps=1e-5),
        out_shape=jax.ShapeDtypeStruct((B, S, H), jnp.float32),
        grid=(B,),
        in_specs=[
            pl.BlockSpec((1, S, H), lambda b: (b, 0, 0)),
            pl.BlockSpec((H, 3 * H), lambda b: (0, 0)), vspec(3 * H),
            pl.BlockSpec((H, H), lambda b: (0, 0)), vspec(H),
            vspec(H), vspec(H),
            pl.BlockSpec((H, ff), lambda b: (0, 0)), vspec(ff),
            pl.BlockSpec((ff, H), lambda b: (0, 0)), vspec(H),
            vspec(H), vspec(H),
        ],
        out_specs=pl.BlockSpec((1, S, H), lambda b: (b, 0, 0)),
        compiler_params=_compiler_params(need),
        cost_estimate=ce,
    )(x,
      p["in_proj"]["w"], row(p["in_proj"]["b"]),
      p["out_proj"]["w"], row(p["out_proj"]["b"]),
      row(p["ln1_g"]), row(p["ln1_b"]),
      p["ff1"]["w"], row(p["ff1"]["b"]),
      p["ff2"]["w"], row(p["ff2"]["b"]),
      row(p["ln2_g"]), row(p["ln2_b"]))


# --------------------------------------------------------------------------
# Kernel 3: FSQ bottleneck — project_in + quantize + indices + project_out
#           + decoder PositionalEncoding add, all fused (z/codes stay in VMEM)
# --------------------------------------------------------------------------
def _fsq_kernel(h_ref, wi_ref, bi_ref, wo_ref, bo_ref,
                hl_ref, off_ref, sh_ref, hw_ref, bs_ref, pe_ref,
                dec_ref, idx_ref, *, num_codebooks, levels_per_cb):
    h = h_ref[0]                                            # (S, H) f32
    z = jnp.dot(h.astype(jnp.bfloat16), wi_ref[...],
                preferred_element_type=jnp.float32) + bi_ref[...]       # (S, E)
    bounded = jnp.tanh(z + sh_ref[...]) * hl_ref[...] - off_ref[...]    # FSQ.bound
    qz = jnp.round(bounded)                                 # round_ste fwd value
    codes = qz / hw_ref[...]                                # normalized codes
    digits = qz + hw_ref[...]                               # 0 .. L-1
    contrib = digits * bs_ref[...]                          # * per-level basis

    # per-codebook index: VPU/XLU lane reduction over each group of D levels
    C, D = num_codebooks, levels_per_cb
    cols = [jnp.sum(contrib[:, c * D:(c + 1) * D], axis=-1, keepdims=True)
            for c in range(C)]
    idx = jnp.concatenate(cols, axis=-1)                    # (S, C), f32 integers
    idx_ref[0] = jnp.round(idx).astype(jnp.int32)

    q = jnp.dot(codes.astype(jnp.bfloat16), wo_ref[...],
                preferred_element_type=jnp.float32) + bo_ref[...]       # project_out
    dec_ref[0] = (q + pe_ref[0]).astype(dec_ref.dtype)      # decoder PE (fused)


def pallas_fsq_bottleneck(h, p_in, p_out, pe_b, levels, num_codebooks):
    B, S, H = h.shape
    D = len(levels)
    C = num_codebooks
    E = C * D

    lv = np.tile(np.asarray(levels, np.float64), C)
    half_l = ((lv - 1.0) * (1.0 + 1e-3) / 2.0).astype(np.float32)
    offset = np.where(lv % 2 == 0, 0.5, 0.0).astype(np.float32)
    shift = np.arctanh(offset / half_l).astype(np.float32)
    half_width = np.tile(np.asarray(levels, np.int64) // 2, C).astype(np.float32)
    basis = np.cumprod(np.concatenate(
        ([1.0], np.asarray(levels[:-1], np.float64)))).astype(np.float32)
    basis_full = np.tile(basis, C)

    row = lambda a: jnp.asarray(a, jnp.float32).reshape(1, E)
    espec = pl.BlockSpec((1, E), lambda b: (0, 0))
    need = (H * E + E * H) * 2 + (6 * E + H) * 4 + (2 * S * H + 2 * S * E) * 4 * 2

    dec_in, idx = pl.pallas_call(
        functools.partial(_fsq_kernel, num_codebooks=C, levels_per_cb=D),
        out_shape=(jax.ShapeDtypeStruct((B, S, H), jnp.float32),
                   jax.ShapeDtypeStruct((B, S, C), jnp.int32)),
        grid=(B,),
        in_specs=[
            pl.BlockSpec((1, S, H), lambda b: (b, 0, 0)),
            pl.BlockSpec((H, E), lambda b: (0, 0)), espec,
            pl.BlockSpec((E, H), lambda b: (0, 0)),
            pl.BlockSpec((1, H), lambda b: (0, 0)),
            espec, espec, espec, espec, espec,
            pl.BlockSpec((1, 1, H), lambda b: (b, 0, 0)),
        ],
        out_specs=(pl.BlockSpec((1, S, H), lambda b: (b, 0, 0)),
                   pl.BlockSpec((1, S, C), lambda b: (b, 0, 0))),
        compiler_params=_compiler_params(need),
    )(h, p_in["w"], row(p_in["b"]), p_out["w"], p_out["b"].reshape(1, H),
      row(half_l), row(offset), row(shift), row(half_width), row(basis_full),
      pe_b)
    return dec_in, idx


# --------------------------------------------------------------------------
# Kernel 4: decoder output Linear
# --------------------------------------------------------------------------
def _linear_out_kernel(x_ref, w_ref, b_ref, o_ref):
    y = jnp.dot(x_ref[0].astype(jnp.bfloat16), w_ref[...],
                preferred_element_type=jnp.float32) + b_ref[...]
    o_ref[0] = y.astype(o_ref.dtype)


def pallas_linear_out(x, w_bf16, b):
    B, S, H = x.shape
    P = w_bf16.shape[1]
    need = H * P * 2 + P * 4 + (S * H + S * P) * 4 * 2
    return pl.pallas_call(
        _linear_out_kernel,
        out_shape=jax.ShapeDtypeStruct((B, S, P), jnp.float32),
        grid=(B,),
        in_specs=[pl.BlockSpec((1, S, H), lambda b: (b, 0, 0)),
                  pl.BlockSpec((H, P), lambda b: (0, 0)),
                  pl.BlockSpec((1, P), lambda b: (0, 0))],
        out_specs=pl.BlockSpec((1, S, P), lambda b: (b, 0, 0)),
        compiler_params=_compiler_params(need),
    )(x, w_bf16, b.reshape(1, P))


# --------------------------------------------------------------------------
# Parameters (deterministic synthetic init; matmul weights bf16 for the MXU)
# --------------------------------------------------------------------------
def init_params(key, *, pose_dim_flat, hidden, ff, num_layers, num_codebooks,
                levels):
    E = num_codebooks * len(levels)
    keys = iter(jax.random.split(key, 512))

    def lin(kin, kout, bias=True):
        w = (jax.random.normal(next(keys), (kin, kout), jnp.float32) * 0.05
             ).astype(jnp.bfloat16)
        b = (jax.random.normal(next(keys), (kout,), jnp.float32) * 0.05
             if bias else jnp.zeros((kout,), jnp.float32))
        return {"w": w, "b": b}

    def tlayer():   # nn.TransformerEncoderLayer (post-LN, relu, batch_first)
        return {
            "in_proj": lin(hidden, 3 * hidden),
            "out_proj": lin(hidden, hidden),
            "ln1_g": jnp.ones((hidden,), jnp.float32),
            "ln1_b": jnp.zeros((hidden,), jnp.float32),
            "ff1": lin(hidden, ff),
            "ff2": lin(ff, hidden),
            "ln2_g": jnp.ones((hidden,), jnp.float32),
            "ln2_b": jnp.zeros((hidden,), jnp.float32),
        }

    return {
        "enc_in": lin(pose_dim_flat, hidden, bias=False),   # Linear(bias=False)
        "enc_layers": [tlayer() for _ in range(num_layers)],
        "fsq_in": lin(hidden, E),                            # FSQ.project_in
        "fsq_out": lin(E, hidden),                           # FSQ.project_out
        "dec_layers": [tlayer() for _ in range(num_layers)],
        "dec_out": lin(hidden, pose_dim_flat),
    }


# --------------------------------------------------------------------------
# Forward pass
# --------------------------------------------------------------------------
def pose_fsq_autoencoder_forward(x, params, pe, *, nhead, num_codebooks,
                                 levels, pose_dims):
    B, S = x.shape[0], x.shape[1]
    # Faithful to the PyTorch module: with batch_first data the PE is indexed
    # by x.size(0) == batch and broadcast over the sequence axis.
    pe_b = pe[:B]                                            # (B, 1, H)

    # ----- encoder -----
    h = x.reshape(B, S, -1)                                  # Flatten(start_dim=2)
    # Dropout(0.15) / PE dropout(0.1): identity in eval mode.
    h = pallas_embed_pe(h, params["enc_in"]["w"], pe_b)
    for p in params["enc_layers"]:
        h = pallas_transformer_layer(h, p, nhead=nhead)

    # ----- FSQ bottleneck (+ decoder PositionalEncoding, fused) -----
    d, indices = pallas_fsq_bottleneck(h, params["fsq_in"], params["fsq_out"],
                                       pe_b, levels, num_codebooks)

    # ----- decoder -----
    for p in params["dec_layers"]:
        d = pallas_transformer_layer(d, p, nhead=nhead)
    out = pallas_linear_out(d, params["dec_out"]["w"], params["dec_out"]["b"])
    out = out.reshape(B, S, *pose_dims)                      # Unflatten(dim=2)
    return out, indices


# --------------------------------------------------------------------------
if __name__ == "__main__":
    # Small shapes consistent with the module's forward.
    B, S = 2, 8
    pose_dims = (6, 3)
    hidden, nhead, dim_feedforward, num_layers = 32, 4, 64, 2
    codebook_size = 2 ** 4
    num_codebooks = 4
    levels = tuple(estimate_levels(codebook_size))            # (4, 4)

    key = jax.random.PRNGKey(0)
    kx, kp = jax.random.split(key)
    x = jax.random.normal(kx, (B, S, *pose_dims), jnp.float32)
    params = init_params(kp, pose_dim_flat=math.prod(pose_dims), hidden=hidden,
                         ff=dim_feedforward, num_layers=num_layers,
                         num_codebooks=num_codebooks, levels=levels)
    pe = positional_encoding_table(64, hidden)

    fwd = jax.jit(functools.partial(
        pose_fsq_autoencoder_forward, nhead=nhead, num_codebooks=num_codebooks,
        levels=levels, pose_dims=pose_dims))

    recon, indices = fwd(x, params, pe)
    jax.block_until_ready((recon, indices))

    assert recon.shape == (B, S, *pose_dims), recon.shape
    assert recon.dtype == jnp.float32
    assert indices.shape == (B, S, num_codebooks), indices.shape
    assert indices.dtype == jnp.int32
    assert bool(jnp.all(indices >= 0)) and bool(jnp.all(indices < codebook_size))
    print("KERNEL_OK")
</pallas_src>

<mosaic_0001>
module attributes {stable_mosaic.version = 11 : i64} {
  func.func @_embed_pe_kernel(%arg0: i32, %arg1: memref<1x8x18xf32, #tpu.memory_space<vmem>>, %arg2: memref<18x32xbf16, #tpu.memory_space<vmem>>, %arg3: memref<1x1x32xf32, #tpu.memory_space<vmem>>, %arg4: memref<1x8x32xf32, #tpu.memory_space<vmem>>) attributes {dimension_semantics = [#tpu.dimension_semantics<parallel>], iteration_bounds = array<i64: 2>, scalar_prefetch = 0 : i64, scratch_operands = 0 : i64, tpu.core_type = #tpu.core_type<tc>, window_params = [{transform_indices = @transform_0, window_bounds = array<i64: 1, 8, 18>}, {pipeline_mode = #tpu.pipeline_mode<synchronous>, transform_indices = @transform_1, window_bounds = array<i64: 18, 32>}, {transform_indices = @transform_2, window_bounds = array<i64: 1, 1, 32>}, {transform_indices = @transform_3, window_bounds = array<i64: 1, 8, 32>}]} {
    %c0 = arith.constant 0 : index
    %c0_0 = arith.constant 0 : index
    %c0_1 = arith.constant 0 : index
    %0 = vector.load %arg1[%c0, %c0_0, %c0_1] : memref<1x8x18xf32, #tpu.memory_space<vmem>>, vector<1x8x18xf32>
    %1 = vector.shape_cast %0 : vector<1x8x18xf32> to vector<8x18xf32>
    %2 = arith.truncf %1 : vector<8x18xf32> to vector<8x18xbf16>
    %c0_2 = arith.constant 0 : index
    %c0_3 = arith.constant 0 : index
    %3 = vector.load %arg2[%c0_2, %c0_3] : memref<18x32xbf16, #tpu.memory_space<vmem>>, vector<18x32xbf16>
    %cst = arith.constant dense<0.000000e+00> : vector<8x32xf32>
    %4 = tpu.matmul %2, %3, %cst {dimension_numbers = #tpu.dot_dimension_numbers<[1], [0], [0], [1], [0, 0, 1, 1], [], []>} : vector<8x18xbf16>, vector<18x32xbf16>, vector<8x32xf32> -> vector<8x32xf32>
    %c0_4 = arith.constant 0 : index
    %c0_5 = arith.constant 0 : index
    %c0_6 = arith.constant 0 : index
    %5 = vector.load %arg3[%c0_4, %c0_5, %c0_6] : memref<1x1x32xf32, #tpu.memory_space<vmem>>, vector<1x1x32xf32>
    %6 = vector.shape_cast %5 : vector<1x1x32xf32> to vector<1x32xf32>
    %7 = vector.broadcast %6 : vector<1x32xf32> to vector<8x32xf32>
    %8 = arith.addf %4, %7 : vector<8x32xf32>
    %c0_7 = arith.constant 0 : index
    %c0_8 = arith.constant 0 : index
    %c0_9 = arith.constant 0 : index
    %9 = vector.load %arg4[%c0_7, %c0_8, %c0_9] : memref<1x8x32xf32, #tpu.memory_space<vmem>>, vector<1x8x32xf32>
    %10 = vector.shape_cast %9 : vector<1x8x32xf32> to vector<8x32xf32>
    %11 = vector.shape_cast %8 : vector<8x32xf32> to vector<1x8x32xf32>
    tpu.vector_store %arg4[%c0_7, %c0_8, %c0_9], %11 {strides = array<i32>} : memref<1x8x32xf32, #tpu.memory_space<vmem>>, vector<1x8x32xf32>,
    return
  }
  func.func @transform_0(%arg0: i32) -> (i32, i32, i32) {
    %c0_i32 = arith.constant 0 : i32
    %c0_i32_0 = arith.constant 0 : i32
    %c0_i32_1 = arith.constant 0 : i32
    return %arg0, %c0_i32, %c0_i32_0 : i32, i32, i32
  }
  func.func @transform_1(%arg0: i32) -> (i32, i32) {
    %c0_i32 = arith.constant 0 : i32
    %c0_i32_0 = arith.constant 0 : i32
    %c0_i32_1 = arith.constant 0 : i32
    return %c0_i32, %c0_i32_0 : i32, i32
  }
  func.func @transform_2(%arg0: i32) -> (i32, i32, i32) {
    %c0_i32 = arith.constant 0 : i32
    %c0_i32_0 = arith.constant 0 : i32
    %c0_i32_1 = arith.constant 0 : i32
    return %arg0, %c0_i32, %c0_i32_0 : i32, i32, i32
  }
  func.func @transform_3(%arg0: i32) -> (i32, i32, i32) {
    %c0_i32 = arith.constant 0 : i32
    %c0_i32_0 = arith.constant 0 : i32
    %c0_i32_1 = arith.constant 0 : i32
    return %arg0, %c0_i32, %c0_i32_0 : i32, i32, i32
  }
}

module attributes {stable_mosaic.version = 11 : i64} {
  func.func @_tx_layer_kernel(%arg0: i32, %arg1: memref<1x8x32xf32, #tpu.memory_space<vmem>>, %arg2: memref<32x96xbf16, #tpu.memory_space<vmem>>, %arg3: memref<1x96xf32, #tpu.memory_space<vmem>>, %arg4: memref<32x32xbf16, #tpu.memory_space<vmem>>, %arg5: memref<1x32xf32, #tpu.memory_space<vmem>>, %arg6: memref<1x32xf32, #tpu.memory_space<vmem>>, %arg7: memref<1x32xf32, #tpu.memory_space<vmem>>, %arg8: memref<32x64xbf16, #tpu.memory_space<vmem>>, %arg9: memref<1x64xf32, #tpu.memory_space<vmem>>, %arg10: memref<64x32xbf16, #tpu.memory_space<vmem>>, %arg11: memref<1x32xf32, #tpu.memory_space<vmem>>, %arg12: memref<1x32xf32, #tpu.memory_space<vmem>>, %arg13: memref<1x32xf32, #tpu.memory_space<vmem>>, %arg14: memref<1x8x32xf32, #tpu.memory_space<vmem>>) attributes {dimension_semantics = [#tpu.dimension_semantics<parallel>], iteration_bounds = array<i64: 2>, scalar_prefetch = 0 : i64, scratch_operands = 0 : i64, tpu.core_type = #tpu.core_type<tc>, window_params = [{transform_indices = @transform_0, window_bounds = array<i64: 1, 8, 32>}, {pipeline_mode = #tpu.pipeline_mode<synchronous>, transform_indices = @transform_1, window_bounds = array<i64: 32, 96>}, {pipeline_mode = #tpu.pipeline_mode<synchronous>, transform_indices = @transform_2, window_bounds = array<i64: 1, 96>}, {pipeline_mode = #tpu.pipeline_mode<synchronous>, transform_indices = @transform_3, window_bounds = array<i64: 32, 32>}, {pipeline_mode = #tpu.pipeline_mode<synchronous>, transform_indices = @transform_4, window_bounds = array<i64: 1, 32>}, {pipeline_mode = #tpu.pipeline_mode<synchronous>, transform_indices = @transform_5, window_bounds = array<i64: 1, 32>}, {pipeline_mode = #tpu.pipeline_mode<synchronous>, transform_indices = @transform_6, window_bounds = array<i64: 1, 32>}, {pipeline_mode = #tpu.pipeline_mode<synchronous>, transform_indices = @transform_7, window_bounds = array<i64: 32, 64>}, {pipeline_mode = #tpu.pipeline_mode<synchronous>, transform_indices = @transform_8, window_bounds = array<i64: 1, 64>}, {pipeline_mode = #tpu.pipeline_mode<synchronous>, transform_indices = @transform_9, window_bounds = array<i64: 64, 32>}, {pipeline_mode = #tpu.pipeline_mode<synchronous>, transform_indices = @transform_10, window_bounds = array<i64: 1, 32>}, {pipeline_mode = #tpu.pipeline_mode<synchronous>, transform_indices = @transform_11, window_bounds = array<i64: 1, 32>}, {pipeline_mode = #tpu.pipeline_mode<synchronous>, transform_indices = @transform_12, window_bounds = array<i64: 1, 32>}, {transform_indices = @transform_13, window_bounds = array<i64: 1, 8, 32>}]} {
    %c0 = arith.constant 0 : index
    %c0_0 = arith.constant 0 : index
    %c0_1 = arith.constant 0 : index
    %0 = vector.load %arg1[%c0, %c0_0, %c0_1] : memref<1x8x32xf32, #tpu.memory_space<vmem>>, vector<1x8x32xf32>
    %1 = vector.shape_cast %0 : vector<1x8x32xf32> to vector<8x32xf32>
    %2 = arith.truncf %1 : vector<8x32xf32> to vector<8x32xbf16>
    %c0_2 = arith.constant 0 : index
    %c0_3 = arith.constant 0 : index
    %3 = vector.load %arg2[%c0_2, %c0_3] : memref<32x96xbf16, #tpu.memory_space<vmem>>, vector<32x96xbf16>
    %cst = arith.constant dense<0.000000e+00> : vector<8x96xf32>
    %4 = tpu.matmul %2, %3, %cst {dimension_numbers = #tpu.dot_dimension_numbers<[1], [0], [0], [1], [0, 0, 1, 1], [], []>} : vector<8x32xbf16>, vector<32x96xbf16>, vector<8x96xf32> -> vector<8x96xf32>
    %c0_4 = arith.constant 0 : index
    %c0_5 = arith.constant 0 : index
    %5 = vector.load %arg3[%c0_4, %c0_5] : memref<1x96xf32, #tpu.memory_space<vmem>>, vector<1x96xf32>
    %6 = vector.broadcast %5 : vector<1x96xf32> to vector<8x96xf32>
    %7 = arith.addf %4, %6 : vector<8x96xf32>
    %8 = vector.extract_strided_slice %7 {offsets = [0, 0], sizes = [8, 32], strides = [1, 1]} : vector<8x96xf32> to vector<8x32xf32>
    %9 = vector.extract_strided_slice %7 {offsets = [0, 32], sizes = [8, 32], strides = [1, 1]} : vector<8x96xf32> to vector<8x32xf32>
    %10 = vector.extract_strided_slice %7 {offsets = [0, 64], sizes = [8, 32], strides = [1, 1]} : vector<8x96xf32> to vector<8x32xf32>
    %11 = vector.extract_strided_slice %8 {offsets = [0, 0], sizes = [8, 8], strides = [1, 1]} : vector<8x32xf32> to vector<8x8xf32>
    %12 = arith.truncf %11 : vector<8x8xf32> to vector<8x8xbf16>
    %13 = vector.extract_strided_slice %9 {offsets = [0, 0], sizes = [8, 8], strides = [1, 1]} : vector<8x32xf32> to vector<8x8xf32>
    %14 = arith.truncf %13 : vector<8x8xf32> to vector<8x8xbf16>
    %15 = vector.extract_strided_slice %10 {offsets = [0, 0], sizes = [8, 8], strides = [1, 1]} : vector<8x32xf32> to vector<8x8xf32>
    %16 = arith.truncf %15 : vector<8x8xf32> to vector<8x8xbf16>
    "tpu.trace_start"() <{level = 10 : i32, message = "qd,kd->qk"}> : () -> ()
    %cst_6 = arith.constant dense<0.000000e+00> : vector<8x8xf32>
    %17 = tpu.matmul %12, %14, %cst_6 {dimension_numbers = #tpu.dot_dimension_numbers<[1], [1], [0], [0], [0, 0, 1, 0], [], []>} : vector<8x8xbf16>, vector<8x8xbf16>, vector<8x8xf32> -> vector<8x8xf32>
    "tpu.trace_stop"() : () -> ()
    %cst_7 = arith.constant 0.353553385 : f32
    %18 = vector.broadcast %cst_7 : f32 to vector<8x8xf32>
    %19 = arith.mulf %17, %18 : vector<8x8xf32>
    %cst_8 = arith.constant dense<0xFF800000> : vector<8xf32>
    %20 = vector.multi_reduction <maximumf>, %19, %cst_8 [1] : vector<8x8xf32> to vector<8xf32>
    %21 = vector.shape_cast %20 : vector<8xf32> to vector<8x1xf32>
    %22 = vector.broadcast %21 : vector<8x1xf32> to vector<8x8xf32>
    %23 = arith.subf %19, %22 : vector<8x8xf32>
    %24 = math.exp %23 : vector<8x8xf32>
    %cst_9 = arith.constant dense<0.000000e+00> : vector<8xf32>
    %25 = vector.multi_reduction <add>, %24, %cst_9 [1] : vector<8x8xf32> to vector<8xf32>
    %26 = vector.shape_cast %25 : vector<8xf32> to vector<8x1xf32>
    %27 = tpu.reciprocal %26 {approx = true} : vector<8x1xf32> -> vector<8x1xf32>
    %28 = vector.broadcast %27 : vector<8x1xf32> to vector<8x8xf32>
    %29 = arith.mulf %24, %28 : vector<8x8xf32>
    %30 = arith.truncf %29 : vector<8x8xf32> to vector<8x8xbf16>
    %cst_10 = arith.constant dense<0.000000e+00> : vector<8x8xf32>
    %31 = tpu.matmul %30, %16, %cst_10 {dimension_numbers = #tpu.dot_dimension_numbers<[1], [0], [0], [1], [0, 0, 1, 1], [], []>} : vector<8x8xbf16>, vector<8x8xbf16>, vector<8x8xf32> -> vector<8x8xf32>
    %32 = vector.extract_strided_slice %8 {offsets = [0, 8], sizes = [8, 8], strides = [1, 1]} : vector<8x32xf32> to vector<8x8xf32>
    %33 = arith.truncf %32 : vector<8x8xf32> to vector<8x8xbf16>
    %34 = vector.extract_strided_slice %9 {offsets = [0, 8], sizes = [8, 8], strides = [1, 1]} : vector<8x32xf32> to vector<8x8xf32>
    %35 = arith.truncf %34 : vector<8x8xf32> to vector<8x8xbf16>
    %36 = vector.extract_strided_slice %10 {offsets = [0, 8], sizes = [8, 8], strides = [1, 1]} : vector<8x32xf32> to vector<8x8xf32>
    %37 = arith.truncf %36 : vector<8x8xf32> to vector<8x8xbf16>
    "tpu.trace_start"() <{level = 10 : i32, message = "qd,kd->qk"}> : () -> ()
    %cst_11 = arith.constant dense<0.000000e+00> : vector<8x8xf32>
    %38 = tpu.matmul %33, %35, %cst_11 {dimension_numbers = #tpu.dot_dimension_numbers<[1], [1], [0], [0], [0, 0, 1, 0], [], []>} : vector<8x8xbf16>, vector<8x8xbf16>, vector<8x8xf32> -> vector<8x8xf32>
    "tpu.trace_stop"() : () -> ()
    %cst_12 = arith.constant 0.353553385 : f32
    %39 = vector.broadcast %cst_12 : f32 to vector<8x8xf32>
    %40 = arith.mulf %38, %39 : vector<8x8xf32>
    %cst_13 = arith.constant dense<0xFF800000> : vector<8xf32>
    %41 = vector.multi_reduction <maximumf>, %40, %cst_13 [1] : vector<8x8xf32> to vector<8xf32>
    %42 = vector.shape_cast %41 : vector<8xf32> to vector<8x1xf32>
    %43 = vector.broadcast %42 : vector<8x1xf32> to vector<8x8xf32>
    %44 = arith.subf %40, %43 : vector<8x8xf32>
    %45 = math.exp %44 : vector<8x8xf32>
    %cst_14 = arith.constant dense<0.000000e+00> : vector<8xf32>
    %46 = vector.multi_reduction <add>, %45, %cst_14 [1] : vector<8x8xf32> to vector<8xf32>
    %47 = vector.shape_cast %46 : vector<8xf32> to vector<8x1xf32>
    %48 = tpu.reciprocal %47 {approx = true} : vector<8x1xf32> -> vector<8x1xf32>
    %49 = vector.broadcast %48 : vector<8x1xf32> to vector<8x8xf32>
    %50 = arith.mulf %45, %49 : vector<8x8xf32>
    %51 = arith.truncf %50 : vector<8x8xf32> to vector<8x8xbf16>
    %cst_15 = arith.constant dense<0.000000e+00> : vector<8x8xf32>
    %52 = tpu.matmul %51, %37, %cst_15 {dimension_numbers = #tpu.dot_dimension_numbers<[1], [0], [0], [1], [0, 0, 1, 1], [], []>} : vector<8x8xbf16>, vector<8x8xbf16>, vector<8x8xf32> -> vector<8x8xf32>
    %53 = vector.extract_strided_slice %8 {offsets = [0, 16], sizes = [8, 8], strides = [1, 1]} : vector<8x32xf32> to vector<8x8xf32>
    %54 = arith.truncf %53 : vector<8x8xf32> to vector<8x8xbf16>
    %55 = vector.extract_strided_slice %9 {offsets = [0, 16], sizes = [8, 8], strides = [1, 1]} : vector<8x32xf32> to vector<8x8xf32>
    %56 = arith.truncf %55 : vector<8x8xf32> to vector<8x8xbf16>
    %57 = vector.extract_strided_slice %10 {offsets = [0, 16], sizes = [8, 8], strides = [1, 1]} : vector<8x32xf32> to vector<8x8xf32>
    %58 = arith.truncf %57 : vector<8x8xf32> to vector<8x8xbf16>
    "tpu.trace_start"() <{level = 10 : i32, message = "qd,kd->qk"}> : () -> ()
    %cst_16 = arith.constant dense<0.000000e+00> : vector<8x8xf32>
    %59 = tpu.matmul %54, %56, %cst_16 {dimension_numbers = #tpu.dot_dimension_numbers<[1], [1], [0], [0], [0, 0, 1, 0], [], []>} : vector<8x8xbf16>, vector<8x8xbf16>, vector<8x8xf32> -> vector<8x8xf32>
    "tpu.trace_stop"() : () -> ()
    %cst_17 = arith.constant 0.353553385 : f32
    %60 = vector.broadcast %cst_17 : f32 to vector<8x8xf32>
    %61 = arith.mulf %59, %60 : vector<8x8xf32>
    %cst_18 = arith.constant dense<0xFF800000> : vector<8xf32>
    %62 = vector.multi_reduction <maximumf>, %61, %cst_18 [1] : vector<8x8xf32> to vector<8xf32>
    %63 = vector.shape_cast %62 : vector<8xf32> to vector<8x1xf32>
    %64 = vector.broadcast %63 : vector<8x1xf32> to vector<8x8xf32>
    %65 = arith.subf %61, %64 : vector<8x8xf32>
    %66 = math.exp %65 : vector<8x8xf32>
    %cst_19 = arith.constant dense<0.000000e+00> : vector<8xf32>
    %67 = vector.multi_reduction <add>, %66, %cst_19 [1] : vector<8x8xf32> to vector<8xf32>
    %68 = vector.shape_cast %67 : vector<8xf32> to vector<8x1xf32>
    %69 = tpu.reciprocal %68 {approx = true} : vector<8x1xf32> -> vector<8x1xf32>
    %70 = vector.broadcast %69 : vector<8x1xf32> to vector<8x8xf32>
    %71 = arith.mulf %66, %70 : vector<8x8xf32>
    %72 = arith.truncf %71 : vector<8x8xf32> to vector<8x8xbf16>
    %cst_20 = arith.constant dense<0.000000e+00> : vector<8x8xf32>
    %73 = tpu.matmul %72, %58, %cst_20 {dimension_numbers = #tpu.dot_dimension_numbers<[1], [0], [0], [1], [0, 0, 1, 1], [], []>} : vector<8x8xbf16>, vector<8x8xbf16>, vector<8x8xf32> -> vector<8x8xf32>
    %74 = vector.extract_strided_slice %8 {offsets = [0, 24], sizes = [8, 8], strides = [1, 1]} : vector<8x32xf32> to vector<8x8xf32>
    %75 = arith.truncf %74 : vector<8x8xf32> to vector<8x8xbf16>
    %76 = vector.extract_strided_slice %9 {offsets = [0, 24], sizes = [8, 8], strides = [1, 1]} : vector<8x32xf32> to vector<8x8xf32>
    %77 = arith.truncf %76 : vector<8x8xf32> to vector<8x8xbf16>
    %78 = vector.extract_strided_slice %10 {offsets = [0, 24], sizes = [8, 8], strides = [1, 1]} : vector<8x32xf32> to vector<8x8xf32>
    %79 = arith.truncf %78 : vector<8x8xf32> to vector<8x8xbf16>
    "tpu.trace_start"() <{level = 10 : i32, message = "qd,kd->qk"}> : () -> ()
    %cst_21 = arith.constant dense<0.000000e+00> : vector<8x8xf32>
    %80 = tpu.matmul %75, %77, %cst_21 {dimension_numbers = #tpu.dot_dimension_numbers<[1], [1], [0], [0], [0, 0, 1, 0], [], []>} : vector<8x8xbf16>, vector<8x8xbf16>, vector<8x8xf32> -> vector<8x8xf32>
    "tpu.trace_stop"() : () -> ()
    %cst_22 = arith.constant 0.353553385 : f32
    %81 = vector.broadcast %cst_22 : f32 to vector<8x8xf32>
    %82 = arith.mulf %80, %81 : vector<8x8xf32>
    %cst_23 = arith.constant dense<0xFF800000> : vector<8xf32>
    %83 = vector.multi_reduction <maximumf>, %82, %cst_23 [1] : vector<8x8xf32> to vector<8xf32>
    %84 = vector.shape_cast %83 : vector<8xf32> to vector<8x1xf32>
    %85 = vector.broadcast %84 : vector<8x1xf32> to vector<8x8xf32>
    %86 = arith.subf %82, %85 : vector<8x8xf32>
    %87 = math.exp %86 : vector<8x8xf32>
    %cst_24 = arith.constant dense<0.000000e+00> : vector<8xf32>
    %88 = vector.multi_reduction <add>, %87, %cst_24 [1] : vector<8x8xf32> to vector<8xf32>
    %89 = vector.shape_cast %88 : vector<8xf32> to vector<8x1xf32>
    %90 = tpu.reciprocal %89 {approx = true} : vector<8x1xf32> -> vector<8x1xf32>
    %91 = vector.broadcast %90 : vector<8x1xf32> to vector<8x8xf32>
    %92 = arith.mulf %87, %91 : vector<8x8xf32>
    %93 = arith.truncf %92 : vector<8x8xf32> to vector<8x8xbf16>
    %cst_25 = arith.constant dense<0.000000e+00> : vector<8x8xf32>
    %94 = tpu.matmul %93, %79, %cst_25 {dimension_numbers = #tpu.dot_dimension_numbers<[1], [0], [0], [1], [0, 0, 1, 1], [], []>} : vector<8x8xbf16>, vector<8x8xbf16>, vector<8x8xf32> -> vector<8x8xf32>
    %95 = tpu.concatenate %31, %52, %73, %94 in 1 : vector<8x8xf32>, vector<8x8xf32>, vector<8x8xf32>, vector<8x8xf32> -> vector<8x32xf32>
    %96 = arith.truncf %95 : vector<8x32xf32> to vector<8x32xbf16>
    %c0_26 = arith.constant 0 : index
    %c0_27 = arith.constant 0 : index
    %97 = vector.load %arg4[%c0_26, %c0_27] : memref<32x32xbf16, #tpu.memory_space<vmem>>, vector<32x32xbf16>
    %cst_28 = arith.constant dense<0.000000e+00> : vector<8x32xf32>
    %98 = tpu.matmul %96, %97, %cst_28 {dimension_numbers = #tpu.dot_dimension_numbers<[1], [0], [0], [1], [0, 0, 1, 1], [], []>} : vector<8x32xbf16>, vector<32x32xbf16>, vector<8x32xf32> -> vector<8x32xf32>
    %c0_29 = arith.constant 0 : index
    %c0_30 = arith.constant 0 : index
    %99 = vector.load %arg5[%c0_29, %c0_30] : memref<1x32xf32, #tpu.memory_space<vmem>>, vector<1x32xf32>
    %100 = vector.broadcast %99 : vector<1x32xf32> to vector<8x32xf32>
    %101 = arith.addf %98, %100 : vector<8x32xf32>
    %102 = arith.addf %1, %101 : vector<8x32xf32>
    %c0_31 = arith.constant 0 : index
    %c0_32 = arith.constant 0 : index
    %103 = vector.load %arg6[%c0_31, %c0_32] : memref<1x32xf32, #tpu.memory_space<vmem>>, vector<1x32xf32>
    %c0_33 = arith.constant 0 : index
    %c0_34 = arith.constant 0 : index
    %104 = vector.load %arg7[%c0_33, %c0_34] : memref<1x32xf32, #tpu.memory_space<vmem>>, vector<1x32xf32>
    %cst_35 = arith.constant dense<0.000000e+00> : vector<8xf32>
    %105 = vector.multi_reduction <add>, %102, %cst_35 [1] : vector<8x32xf32> to vector<8xf32>
    %106 = vector.shape_cast %105 : vector<8xf32> to vector<8x1xf32>
    %cst_36 = arith.constant 3.200000e+01 : f32
    %107 = vector.broadcast %cst_36 : f32 to vector<8x1xf32>
    %108 = arith.divf %106, %107 : vector<8x1xf32>
    %109 = vector.broadcast %108 : vector<8x1xf32> to vector<8x32xf32>
    %110 = arith.subf %102, %109 : vector<8x32xf32>
    %111 = arith.mulf %110, %110 : vector<8x32xf32>
    %cst_37 = arith.constant dense<0.000000e+00> : vector<8xf32>
    %112 = vector.multi_reduction <add>, %111, %cst_37 [1] : vector<8x32xf32> to vector<8xf32>
    %113 = vector.shape_cast %112 : vector<8xf32> to vector<8x1xf32>
    %cst_38 = arith.constant 3.200000e+01 : f32
    %114 = vector.broadcast %cst_38 : f32 to vector<8x1xf32>
    %115 = arith.divf %113, %114 : vector<8x1xf32>
    %cst_39 = arith.constant 9.99999974E-6 : f32
    %116 = vector.broadcast %cst_39 : f32 to vector<8x1xf32>
    %117 = arith.addf %115, %116 : vector<8x1xf32>
    %118 = math.rsqrt %117 : vector<8x1xf32>
    %119 = vector.broadcast %118 : vector<8x1xf32> to vector<8x32xf32>
    %120 = arith.mulf %110, %119 : vector<8x32xf32>
    %121 = vector.broadcast %103 : vector<1x32xf32> to vector<8x32xf32>
    %122 = arith.mulf %120, %121 : vector<8x32xf32>
    %123 = vector.broadcast %104 : vector<1x32xf32> to vector<8x32xf32>
    %124 = arith.addf %122, %123 : vector<8x32xf32>
    %125 = arith.truncf %124 : vector<8x32xf32> to vector<8x32xbf16>
    %c0_40 = arith.constant 0 : index
    %c0_41 = arith.constant 0 : index
    %126 = vector.load %arg8[%c0_40, %c0_41] : memref<32x64xbf16, #tpu.memory_space<vmem>>, vector<32x64xbf16>
    %cst_42 = arith.constant dense<0.000000e+00> : vector<8x64xf32>
    %127 = tpu.matmul %125, %126, %cst_42 {dimension_numbers = #tpu.dot_dimension_numbers<[1], [0], [0], [1], [0, 0, 1, 1], [], []>} : vector<8x32xbf16>, vector<32x64xbf16>, vector<8x64xf32> -> vector<8x64xf32>
    %c0_43 = arith.constant 0 : index
    %c0_44 = arith.constant 0 : index
    %128 = vector.load %arg9[%c0_43, %c0_44] : memref<1x64xf32, #tpu.memory_space<vmem>>, vector<1x64xf32>
    %129 = vector.broadcast %128 : vector<1x64xf32> to vector<8x64xf32>
    %130 = arith.addf %127, %129 : vector<8x64xf32>
    %cst_45 = arith.constant 0.000000e+00 : f32
    %131 = vector.broadcast %cst_45 : f32 to vector<8x64xf32>
    %132 = arith.maximumf %130, %131 : vector<8x64xf32>
    %133 = arith.truncf %132 : vector<8x64xf32> to vector<8x64xbf16>
    %c0_46 = arith.constant 0 : index
    %c0_47 = arith.constant 0 : index
    %134 = vector.load %arg10[%c0_46, %c0_47] : memref<64x32xbf16, #tpu.memory_space<vmem>>, vector<64x32xbf16>
    %cst_48 = arith.constant dense<0.000000e+00> : vector<8x32xf32>
    %135 = tpu.matmul %133, %134, %cst_48 {dimension_numbers = #tpu.dot_dimension_numbers<[1], [0], [0], [1], [0, 0, 1, 1], [], []>} : vector<8x64xbf16>, vector<64x32xbf16>, vector<8x32xf32> -> vector<8x32xf32>
    %c0_49 = arith.constant 0 : index
    %c0_50 = arith.constant 0 : index
    %136 = vector.load %arg11[%c0_49, %c0_50] : memref<1x32xf32, #tpu.memory_space<vmem>>, vector<1x32xf32>
    %137 = vector.broadcast %136 : vector<1x32xf32> to vector<8x32xf32>
    %138 = arith.addf %135, %137 : vector<8x32xf32>
    %139 = arith.addf %124, %138 : vector<8x32xf32>
    %c0_51 = arith.constant 0 : index
    %c0_52 = arith.constant 0 : index
    %140 = vector.load %arg12[%c0_51, %c0_52] : memref<1x32xf32, #tpu.memory_space<vmem>>, vector<1x32xf32>
    %c0_53 = arith.constant 0 : index
    %c0_54 = arith.constant 0 : index
    %141 = vector.load %arg13[%c0_53, %c0_54] : memref<1x32xf32, #tpu.memory_space<vmem>>, vector<1x32xf32>
    %cst_55 = arith.constant dense<0.000000e+00> : vector<8xf32>
    %142 = vector.multi_reduction <add>, %139, %cst_55 [1] : vector<8x32xf32> to vector<8xf32>
    %143 = vector.shape_cast %142 : vector<8xf32> to vector<8x1xf32>
    %cst_56 = arith.constant 3.200000e+01 : f32
    %144 = vector.broadcast %cst_56 : f32 to vector<8x1xf32>
    %145 = arith.divf %143, %144 : vector<8x1xf32>
    %146 = vector.broadcast %145 : vector<8x1xf32> to vector<8x32xf32>
    %147 = arith.subf %139, %146 : vector<8x32xf32>
    %148 = arith.mulf %147, %147 : vector<8x32xf32>
    %cst_57 = arith.constant dense<0.000000e+00> : vector<8xf32>
    %149 = vector.multi_reduction <add>, %148, %cst_57 [1] : vector<8x32xf32> to vector<8xf32>
    %150 = vector.shape_cast %149 : vector<8xf32> to vector<8x1xf32>
    %cst_58 = arith.constant 3.200000e+01 : f32
    %151 = vector.broadcast %cst_58 : f32 to vector<8x1xf32>
    %152 = arith.divf %150, %151 : vector<8x1xf32>
    %cst_59 = arith.constant 9.99999974E-6 : f32
    %153 = vector.broadcast %cst_59 : f32 to vector<8x1xf32>
    %154 = arith.addf %152, %153 : vector<8x1xf32>
    %155 = math.rsqrt %154 : vector<8x1xf32>
    %156 = vector.broadcast %155 : vector<8x1xf32> to vector<8x32xf32>
    %157 = arith.mulf %147, %156 : vector<8x32xf32>
    %158 = vector.broadcast %140 : vector<1x32xf32> to vector<8x32xf32>
    %159 = arith.mulf %157, %158 : vector<8x32xf32>
    %160 = vector.broadcast %141 : vector<1x32xf32> to vector<8x32xf32>
    %161 = arith.addf %159, %160 : vector<8x32xf32>
    %c0_60 = arith.constant 0 : index
    %c0_61 = arith.constant 0 : index
    %c0_62 = arith.constant 0 : index
    %162 = vector.load %arg14[%c0_60, %c0_61, %c0_62] : memref<1x8x32xf32, #tpu.memory_space<vmem>>, vector<1x8x32xf32>
    %163 = vector.shape_cast %162 : vector<1x8x32xf32> to vector<8x32xf32>
    %164 = vector.shape_cast %161 : vector<8x32xf32> to vector<1x8x32xf32>
    tpu.vector_store %arg14[%c0_60, %c0_61, %c0_62], %164 {strides = array<i32>} : memref<1x8x32xf32, #tpu.memory_space<vmem>>, vector<1x8x32xf32>,
    return
  }
  func.func @transform_0(%arg0: i32) -> (i32, i32, i32) {
    %c0_i32 = arith.constant 0 : i32
    %c0_i32_0 = arith.constant 0 : i32
    %c0_i32_1 = arith.constant 0 : i32
    return %arg0, %c0_i32, %c0_i32_0 : i32, i32, i32
  }
  func.func @transform_1(%arg0: i32) -> (i32, i32) {
    %c0_i32 = arith.constant 0 : i32
    %c0_i32_0 = arith.constant 0 : i32
    %c0_i32_1 = arith.constant 0 : i32
    return %c0_i32, %c0_i32_0 : i32, i32
  }
  func.func @transform_2(%arg0: i32) -> (i32, i32) {
    %c0_i32 = arith.constant 0 : i32
    %c0_i32_0 = arith.constant 0 : i32
    %c0_i32_1 = arith.constant 0 : i32
    return %c0_i32, %c0_i32_0 : i32, i32
  }
  func.func @transform_3(%arg0: i32) -> (i32, i32) {
    %c0_i32 = arith.constant 0 : i32
    %c0_i32_0 = arith.constant 0 : i32
    %c0_i32_1 = arith.constant 0 : i32
    return %c0_i32, %c0_i32_0 : i32, i32
  }
  func.func @transform_4(%arg0: i32) -> (i32, i32) {
    %c0_i32 = arith.constant 0 : i32
    %c0_i32_0 = arith.constant 0 : i32
    %c0_i32_1 = arith.constant 0 : i32
    return %c0_i32, %c0_i32_0 : i32, i32
  }
  func.func @transform_5(%arg0: i32) -> (i32, i32) {
    %c0_i32 = arith.constant 0 : i32
    %c0_i32_0 = arith.constant 0 : i32
    %c0_i32_1 = arith.constant 0 : i32
    return %c0_i32, %c0_i32_0 : i32, i32
  }
  func.func @transform_6(%arg0: i32) -> (i32, i32) {
    %c0_i32 = arith.constant 0 : i32
    %c0_i32_0 = arith.constant 0 : i32
    %c0_i32_1 = arith.constant 0 : i32
    return %c0_i32, %c0_i32_0 : i32, i32
  }
  func.func @transform_7(%arg0: i32) -> (i32, i32) {
    %c0_i32 = arith.constant 0 : i32
    %c0_i32_0 = arith.constant 0 : i32
    %c0_i32_1 = arith.constant 0 : i32
    return %c0_i32, %c0_i32_0 : i32, i32
  }
  func.func @transform_8(%arg0: i32) -> (i32, i32) {
    %c0_i32 = arith.constant 0 : i32
    %c0_i32_0 = arith.constant 0 : i32
    %c0_i32_1 = arith.constant 0 : i32
    return %c0_i32, %c0_i32_0 : i32, i32
  }
  func.func @transform_9(%arg0: i32) -> (i32, i32) {
    %c0_i32 = arith.constant 0 : i32
    %c0_i32_0 = arith.constant 0 : i32
    %c0_i32_1 = arith.constant 0 : i32
    return %c0_i32, %c0_i32_0 : i32, i32
  }
  func.func @transform_10(%arg0: i32) -> (i32, i32) {
    %c0_i32 = arith.constant 0 : i32
    %c0_i32_0 = arith.constant 0 : i32
    %c0_i32_1 = arith.constant 0 : i32
    return %c0_i32, %c0_i32_0 : i32, i32
  }
  func.func @transform_11(%arg0: i32) -> (i32, i32) {
    %c0_i32 = arith.constant 0 : i32
    %c0_i32_0 = arith.constant 0 : i32
    %c0_i32_1 = arith.constant 0 : i32
    return %c0_i32, %c0_i32_0 : i32, i32
  }
  func.func @transform_12(%arg0: i32) -> (i32, i32) {
    %c0_i32 = arith.constant 0 : i32
    %c0_i32_0 = arith.constant 0 : i32
    %c0_i32_1 = arith.constant 0 : i32
    return %c0_i32, %c0_i32_0 : i32, i32
  }
  func.func @transform_13(%arg0: i32) -> (i32, i32, i32) {
    %c0_i32 = arith.constant 0 : i32
    %c0_i32_0 = arith.constant 0 : i32
    %c0_i32_1 = arith.constant 0 : i32
    return %arg0, %c0_i32, %c0_i32_0 : i32, i32, i32
  }
}

module attributes {stable_mosaic.version = 11 : i64} {
  func.func @_fsq_kernel(%arg0: i32, %arg1: memref<1x8x32xf32, #tpu.memory_space<vmem>>, %arg2: memref<32x8xbf16, #tpu.memory_space<vmem>>, %arg3: memref<1x8xf32, #tpu.memory_space<vmem>>, %arg4: memref<8x32xbf16, #tpu.memory_space<vmem>>, %arg5: memref<1x32xf32, #tpu.memory_space<vmem>>, %arg6: memref<1x8xf32, #tpu.memory_space<vmem>>, %arg7: memref<1x8xf32, #tpu.memory_space<vmem>>, %arg8: memref<1x8xf32, #tpu.memory_space<vmem>>, %arg9: memref<1x8xf32, #tpu.memory_space<vmem>>, %arg10: memref<1x8xf32, #tpu.memory_space<vmem>>, %arg11: memref<1x1x32xf32, #tpu.memory_space<vmem>>, %arg12: memref<1x8x32xf32, #tpu.memory_space<vmem>>, %arg13: memref<1x8x4xi32, #tpu.memory_space<vmem>>) attributes {dimension_semantics = [#tpu.dimension_semantics<parallel>], iteration_bounds = array<i64: 2>, scalar_prefetch = 0 : i64, scratch_operands = 0 : i64, tpu.core_type = #tpu.core_type<tc>, window_params = [{transform_indices = @transform_0, window_bounds = array<i64: 1, 8, 32>}, {pipeline_mode = #tpu.pipeline_mode<synchronous>, transform_indices = @transform_1, window_bounds = array<i64: 32, 8>}, {pipeline_mode = #tpu.pipeline_mode<synchronous>, transform_indices = @transform_2, window_bounds = array<i64: 1, 8>}, {pipeline_mode = #tpu.pipeline_mode<synchronous>, transform_indices = @transform_3, window_bounds = array<i64: 8, 32>}, {pipeline_mode = #tpu.pipeline_mode<synchronous>, transform_indices = @transform_4, window_bounds = array<i64: 1, 32>}, {pipeline_mode = #tpu.pipeline_mode<synchronous>, transform_indices = @transform_5, window_bounds = array<i64: 1, 8>}, {pipeline_mode = #tpu.pipeline_mode<synchronous>, transform_indices = @transform_6, window_bounds = array<i64: 1, 8>}, {pipeline_mode = #tpu.pipeline_mode<synchronous>, transform_indices = @transform_7, window_bounds = array<i64: 1, 8>}, {pipeline_mode = #tpu.pipeline_mode<synchronous>, transform_indices = @transform_8, window_bounds = array<i64: 1, 8>}, {pipeline_mode = #tpu.pipeline_mode<synchronous>, transform_indices = @transform_9, window_bounds = array<i64: 1, 8>}, {transform_indices = @transform_10, window_bounds = array<i64: 1, 1, 32>}, {transform_indices = @transform_11, window_bounds = array<i64: 1, 8, 32>}, {transform_indices = @transform_12, window_bounds = array<i64: 1, 8, 4>}]} {
    %c0 = arith.constant 0 : index
    %c0_0 = arith.constant 0 : index
    %c0_1 = arith.constant 0 : index
    %0 = vector.load %arg1[%c0, %c0_0, %c0_1] : memref<1x8x32xf32, #tpu.memory_space<vmem>>, vector<1x8x32xf32>
    %1 = vector.shape_cast %0 : vector<1x8x32xf32> to vector<8x32xf32>
    %2 = arith.truncf %1 : vector<8x32xf32> to vector<8x32xbf16>
    %c0_2 = arith.constant 0 : index
    %c0_3 = arith.constant 0 : index
    %3 = vector.load %arg2[%c0_2, %c0_3] : memref<32x8xbf16, #tpu.memory_space<vmem>>, vector<32x8xbf16>
    %cst = arith.constant dense<0.000000e+00> : vector<8x8xf32>
    %4 = tpu.matmul %2, %3, %cst {dimension_numbers = #tpu.dot_dimension_numbers<[1], [0], [0], [1], [0, 0, 1, 1], [], []>} : vector<8x32xbf16>, vector<32x8xbf16>, vector<8x8xf32> -> vector<8x8xf32>
    %c0_4 = arith.constant 0 : index
    %c0_5 = arith.constant 0 : index
    %5 = vector.load %arg3[%c0_4, %c0_5] : memref<1x8xf32, #tpu.memory_space<vmem>>, vector<1x8xf32>
    %6 = vector.broadcast %5 : vector<1x8xf32> to vector<8x8xf32>
    %7 = arith.addf %4, %6 : vector<8x8xf32>
    %c0_6 = arith.constant 0 : index
    %c0_7 = arith.constant 0 : index
    %8 = vector.load %arg8[%c0_6, %c0_7] : memref<1x8xf32, #tpu.memory_space<vmem>>, vector<1x8xf32>
    %9 = vector.broadcast %8 : vector<1x8xf32> to vector<8x8xf32>
    %10 = arith.addf %7, %9 : vector<8x8xf32>
    %11 = math.tanh %10 : vector<8x8xf32>
    %c0_8 = arith.constant 0 : index
    %c0_9 = arith.constant 0 : index
    %12 = vector.load %arg6[%c0_8, %c0_9] : memref<1x8xf32, #tpu.memory_space<vmem>>, vector<1x8xf32>
    %13 = vector.broadcast %12 : vector<1x8xf32> to vector<8x8xf32>
    %14 = arith.mulf %11, %13 : vector<8x8xf32>
    %c0_10 = arith.constant 0 : index
    %c0_11 = arith.constant 0 : index
    %15 = vector.load %arg7[%c0_10, %c0_11] : memref<1x8xf32, #tpu.memory_space<vmem>>, vector<1x8xf32>
    %16 = vector.broadcast %15 : vector<1x8xf32> to vector<8x8xf32>
    %17 = arith.subf %14, %16 : vector<8x8xf32>
    %18 = math.roundeven %17 : vector<8x8xf32>
    %c0_12 = arith.constant 0 : index
    %c0_13 = arith.constant 0 : index
    %19 = vector.load %arg9[%c0_12, %c0_13] : memref<1x8xf32, #tpu.memory_space<vmem>>, vector<1x8xf32>
    %20 = vector.broadcast %19 : vector<1x8xf32> to vector<8x8xf32>
    %21 = arith.divf %18, %20 : vector<8x8xf32>
    %c0_14 = arith.constant 0 : index
    %c0_15 = arith.constant 0 : index
    %22 = vector.load %arg9[%c0_14, %c0_15] : memref<1x8xf32, #tpu.memory_space<vmem>>, vector<1x8xf32>
    %23 = vector.broadcast %22 : vector<1x8xf32> to vector<8x8xf32>
    %24 = arith.addf %18, %23 : vector<8x8xf32>
    %c0_16 = arith.constant 0 : index
    %c0_17 = arith.constant 0 : index
    %25 = vector.load %arg10[%c0_16, %c0_17] : memref<1x8xf32, #tpu.memory_space<vmem>>, vector<1x8xf32>
    %26 = vector.broadcast %25 : vector<1x8xf32> to vector<8x8xf32>
    %27 = arith.mulf %24, %26 : vector<8x8xf32>
    %28 = vector.extract_strided_slice %27 {offsets = [0, 0], sizes = [8, 2], strides = [1, 1]} : vector<8x8xf32> to vector<8x2xf32>
    %cst_18 = arith.constant dense<0.000000e+00> : vector<8xf32>
    %29 = vector.multi_reduction <add>, %28, %cst_18 [1] : vector<8x2xf32> to vector<8xf32>
    %30 = vector.shape_cast %29 : vector<8xf32> to vector<8x1xf32>
    %31 = vector.extract_strided_slice %27 {offsets = [0, 2], sizes = [8, 2], strides = [1, 1]} : vector<8x8xf32> to vector<8x2xf32>
    %cst_19 = arith.constant dense<0.000000e+00> : vector<8xf32>
    %32 = vector.multi_reduction <add>, %31, %cst_19 [1] : vector<8x2xf32> to vector<8xf32>
    %33 = vector.shape_cast %32 : vector<8xf32> to vector<8x1xf32>
    %34 = vector.extract_strided_slice %27 {offsets = [0, 4], sizes = [8, 2], strides = [1, 1]} : vector<8x8xf32> to vector<8x2xf32>
    %cst_20 = arith.constant dense<0.000000e+00> : vector<8xf32>
    %35 = vector.multi_reduction <add>, %34, %cst_20 [1] : vector<8x2xf32> to vector<8xf32>
    %36 = vector.shape_cast %35 : vector<8xf32> to vector<8x1xf32>
    %37 = vector.extract_strided_slice %27 {offsets = [0, 6], sizes = [8, 2], strides = [1, 1]} : vector<8x8xf32> to vector<8x2xf32>
    %cst_21 = arith.constant dense<0.000000e+00> : vector<8xf32>
    %38 = vector.multi_reduction <add>, %37, %cst_21 [1] : vector<8x2xf32> to vector<8xf32>
    %39 = vector.shape_cast %38 : vector<8xf32> to vector<8x1xf32>
    %40 = tpu.concatenate %30, %33, %36, %39 in 1 : vector<8x1xf32>, vector<8x1xf32>, vector<8x1xf32>, vector<8x1xf32> -> vector<8x4xf32>
    %41 = math.roundeven %40 : vector<8x4xf32>
    %42 = arith.fptosi %41 : vector<8x4xf32> to vector<8x4xi32>
    %c0_22 = arith.constant 0 : index
    %c0_23 = arith.constant 0 : index
    %c0_24 = arith.constant 0 : index
    %43 = vector.load %arg13[%c0_22, %c0_23, %c0_24] : memref<1x8x4xi32, #tpu.memory_space<vmem>>, vector<1x8x4xi32>
    %44 = vector.shape_cast %43 : vector<1x8x4xi32> to vector<8x4xi32>
    %45 = vector.shape_cast %42 : vector<8x4xi32> to vector<1x8x4xi32>
    tpu.vector_store %arg13[%c0_22, %c0_23, %c0_24], %45 {strides = array<i32>} : memref<1x8x4xi32, #tpu.memory_space<vmem>>, vector<1x8x4xi32>,
    %46 = arith.truncf %21 : vector<8x8xf32> to vector<8x8xbf16>
    %c0_25 = arith.constant 0 : index
    %c0_26 = arith.constant 0 : index
    %47 = vector.load %arg4[%c0_25, %c0_26] : memref<8x32xbf16, #tpu.memory_space<vmem>>, vector<8x32xbf16>
    %cst_27 = arith.constant dense<0.000000e+00> : vector<8x32xf32>
    %48 = tpu.matmul %46, %47, %cst_27 {dimension_numbers = #tpu.dot_dimension_numbers<[1], [0], [0], [1], [0, 0, 1, 1], [], []>} : vector<8x8xbf16>, vector<8x32xbf16>, vector<8x32xf32> -> vector<8x32xf32>
    %c0_28 = arith.constant 0 : index
    %c0_29 = arith.constant 0 : index
    %49 = vector.load %arg5[%c0_28, %c0_29] : memref<1x32xf32, #tpu.memory_space<vmem>>, vector<1x32xf32>
    %50 = vector.broadcast %49 : vector<1x32xf32> to vector<8x32xf32>
    %51 = arith.addf %48, %50 : vector<8x32xf32>
    %c0_30 = arith.constant 0 : index
    %c0_31 = arith.constant 0 : index
    %c0_32 = arith.constant 0 : index
    %52 = vector.load %arg11[%c0_30, %c0_31, %c0_32] : memref<1x1x32xf32, #tpu.memory_space<vmem>>, vector<1x1x32xf32>
    %53 = vector.shape_cast %52 : vector<1x1x32xf32> to vector<1x32xf32>
    %54 = vector.broadcast %53 : vector<1x32xf32> to vector<8x32xf32>
    %55 = arith.addf %51, %54 : vector<8x32xf32>
    %c0_33 = arith.constant 0 : index
    %c0_34 = arith.constant 0 : index
    %c0_35 = arith.constant 0 : index
    %56 = vector.load %arg12[%c0_33, %c0_34, %c0_35] : memref<1x8x32xf32, #tpu.memory_space<vmem>>, vector<1x8x32xf32>
    %57 = vector.shape_cast %56 : vector<1x8x32xf32> to vector<8x32xf32>
    %58 = vector.shape_cast %55 : vector<8x32xf32> to vector<1x8x32xf32>
    tpu.vector_store %arg12[%c0_33, %c0_34, %c0_35], %58 {strides = array<i32>} : memref<1x8x32xf32, #tpu.memory_space<vmem>>, vector<1x8x32xf32>,
    return
  }
  func.func @transform_0(%arg0: i32) -> (i32, i32, i32) {
    %c0_i32 = arith.constant 0 : i32
    %c0_i32_0 = arith.constant 0 : i32
    %c0_i32_1 = arith.constant 0 : i32
    return %arg0, %c0_i32, %c0_i32_0 : i32, i32, i32
  }
  func.func @transform_1(%arg0: i32) -> (i32, i32) {
    %c0_i32 = arith.constant 0 : i32
    %c0_i32_0 = arith.constant 0 : i32
    %c0_i32_1 = arith.constant 0 : i32
    return %c0_i32, %c0_i32_0 : i32, i32
  }
  func.func @transform_2(%arg0: i32) -> (i32, i32) {
    %c0_i32 = arith.constant 0 : i32
    %c0_i32_0 = arith.constant 0 : i32
    %c0_i32_1 = arith.constant 0 : i32
    return %c0_i32, %c0_i32_0 : i32, i32
  }
  func.func @transform_3(%arg0: i32) -> (i32, i32) {
    %c0_i32 = arith.constant 0 : i32
    %c0_i32_0 = arith.constant 0 : i32
    %c0_i32_1 = arith.constant 0 : i32
    return %c0_i32, %c0_i32_0 : i32, i32
  }
  func.func @transform_4(%arg0: i32) -> (i32, i32) {
    %c0_i32 = arith.constant 0 : i32
    %c0_i32_0 = arith.constant 0 : i32
    %c0_i32_1 = arith.constant 0 : i32
    return %c0_i32, %c0_i32_0 : i32, i32
  }
  func.func @transform_5(%arg0: i32) -> (i32, i32) {
    %c0_i32 = arith.constant 0 : i32
    %c0_i32_0 = arith.constant 0 : i32
    %c0_i32_1 = arith.constant 0 : i32
    return %c0_i32, %c0_i32_0 : i32, i32
  }
  func.func @transform_6(%arg0: i32) -> (i32, i32) {
    %c0_i32 = arith.constant 0 : i32
    %c0_i32_0 = arith.constant 0 : i32
    %c0_i32_1 = arith.constant 0 : i32
    return %c0_i32, %c0_i32_0 : i32, i32
  }
  func.func @transform_7(%arg0: i32) -> (i32, i32) {
    %c0_i32 = arith.constant 0 : i32
    %c0_i32_0 = arith.constant 0 : i32
    %c0_i32_1 = arith.constant 0 : i32
    return %c0_i32, %c0_i32_0 : i32, i32
  }
  func.func @transform_8(%arg0: i32) -> (i32, i32) {
    %c0_i32 = arith.constant 0 : i32
    %c0_i32_0 = arith.constant 0 : i32
    %c0_i32_1 = arith.constant 0 : i32
    return %c0_i32, %c0_i32_0 : i32, i32
  }
  func.func @transform_9(%arg0: i32) -> (i32, i32) {
    %c0_i32 = arith.constant 0 : i32
    %c0_i32_0 = arith.constant 0 : i32
    %c0_i32_1 = arith.constant 0 : i32
    return %c0_i32, %c0_i32_0 : i32, i32
  }
  func.func @transform_10(%arg0: i32) -> (i32, i32, i32) {
    %c0_i32 = arith.constant 0 : i32
    %c0_i32_0 = arith.constant 0 : i32
    %c0_i32_1 = arith.constant 0 : i32
    return %arg0, %c0_i32, %c0_i32_0 : i32, i32, i32
  }
  func.func @transform_11(%arg0: i32) -> (i32, i32, i32) {
    %c0_i32 = arith.constant 0 : i32
    %c0_i32_0 = arith.constant 0 : i32
    %c0_i32_1 = arith.constant 0 : i32
    return %arg0, %c0_i32, %c0_i32_0 : i32, i32, i32
  }
  func.func @transform_12(%arg0: i32) -> (i32, i32, i32) {
    %c0_i32 = arith.constant 0 : i32
    %c0_i32_0 = arith.constant 0 : i32
    %c0_i32_1 = arith.constant 0 : i32
    return %arg0, %c0_i32, %c0_i32_0 : i32, i32, i32
  }
}

module attributes {stable_mosaic.version = 11 : i64} {
  func.func @_linear_out_kernel(%arg0: i32, %arg1: memref<1x8x32xf32, #tpu.memory_space<vmem>>, %arg2: memref<32x18xbf16, #tpu.memory_space<vmem>>, %arg3: memref<1x18xf32, #tpu.memory_space<vmem>>, %arg4: memref<1x8x18xf32, #tpu.memory_space<vmem>>) attributes {dimension_semantics = [#tpu.dimension_semantics<parallel>], iteration_bounds = array<i64: 2>, scalar_prefetch = 0 : i64, scratch_operands = 0 : i64, tpu.core_type = #tpu.core_type<tc>, window_params = [{transform_indices = @transform_0, window_bounds = array<i64: 1, 8, 32>}, {pipeline_mode = #tpu.pipeline_mode<synchronous>, transform_indices = @transform_1, window_bounds = array<i64: 32, 18>}, {pipeline_mode = #tpu.pipeline_mode<synchronous>, transform_indices = @transform_2, window_bounds = array<i64: 1, 18>}, {transform_indices = @transform_3, window_bounds = array<i64: 1, 8, 18>}]} {
    %c0 = arith.constant 0 : index
    %c0_0 = arith.constant 0 : index
    %c0_1 = arith.constant 0 : index
    %0 = vector.load %arg1[%c0, %c0_0, %c0_1] : memref<1x8x32xf32, #tpu.memory_space<vmem>>, vector<1x8x32xf32>
    %1 = vector.shape_cast %0 : vector<1x8x32xf32> to vector<8x32xf32>
    %2 = arith.truncf %1 : vector<8x32xf32> to vector<8x32xbf16>
    %c0_2 = arith.constant 0 : index
    %c0_3 = arith.constant 0 : index
    %3 = vector.load %arg2[%c0_2, %c0_3] : memref<32x18xbf16, #tpu.memory_space<vmem>>, vector<32x18xbf16>
    %cst = arith.constant dense<0.000000e+00> : vector<8x18xf32>
    %4 = tpu.matmul %2, %3, %cst {dimension_numbers = #tpu.dot_dimension_numbers<[1], [0], [0], [1], [0, 0, 1, 1], [], []>} : vector<8x32xbf16>, vector<32x18xbf16>, vector<8x18xf32> -> vector<8x18xf32>
    %c0_4 = arith.constant 0 : index
    %c0_5 = arith.constant 0 : index
    %5 = vector.load %arg3[%c0_4, %c0_5] : memref<1x18xf32, #tpu.memory_space<vmem>>, vector<1x18xf32>
    %6 = vector.broadcast %5 : vector<1x18xf32> to vector<8x18xf32>
    %7 = arith.addf %4, %6 : vector<8x18xf32>
    %c0_6 = arith.constant 0 : index
    %c0_7 = arith.constant 0 : index
    %c0_8 = arith.constant 0 : index
    %8 = vector.load %arg4[%c0_6, %c0_7, %c0_8] : memref<1x8x18xf32, #tpu.memory_space<vmem>>, vector<1x8x18xf32>
    %9 = vector.shape_cast %8 : vector<1x8x18xf32> to vector<8x18xf32>
    %10 = vector.shape_cast %7 : vector<8x18xf32> to vector<1x8x18xf32>
    tpu.vector_store %arg4[%c0_6, %c0_7, %c0_8], %10 {strides = array<i32>} : memref<1x8x18xf32, #tpu.memory_space<vmem>>, vector<1x8x18xf32>,
    return
  }
  func.func @transform_0(%arg0: i32) -> (i32, i32, i32) {
    %c0_i32 = arith.constant 0 : i32
    %c0_i32_0 = arith.constant 0 : i32
    %c0_i32_1 = arith.constant 0 : i32
    return %arg0, %c0_i32, %c0_i32_0 : i32, i32, i32
  }
  func.func @transform_1(%arg0: i32) -> (i32, i32) {
    %c0_i32 = arith.constant 0 : i32
    %c0_i32_0 = arith.constant 0 : i32
    %c0_i32_1 = arith.constant 0 : i32
    return %c0_i32, %c0_i32_0 : i32, i32
  }
  func.func @transform_2(%arg0: i32) -> (i32, i32) {
    %c0_i32 = arith.constant 0 : i32
    %c0_i32_0 = arith.constant 0 : i32
    %c0_i32_1 = arith.constant 0 : i32
    return %c0_i32, %c0_i32_0 : i32, i32
  }
  func.func @transform_3(%arg0: i32) -> (i32, i32, i32) {
    %c0_i32 = arith.constant 0 : i32
    %c0_i32_0 = arith.constant 0 : i32
    %c0_i32_1 = arith.constant 0 : i32
    return %arg0, %c0_i32, %c0_i32_0 : i32, i32, i32
  }
}

</mosaic_0001>

<bundles_post_ra>
// kernel: pose_fsq_autoencoder_forward.7
= control target key start
LH: loop header
LB: loop body
LE: loop exit
PB: predicated region body
PF: predicated region fallthrough
CT: control target
= control target key end

     0   :  { %s380_s12 = smov 0   ;;  %s406_s0 = inlined_call_operand.vmem [shape: f32[2,8,18], index: 0, kind: input, shape index: {}]   ;;  %s407_s1 = inlined_call_operand.vmem [shape: bf16[18,32], index: 1, kind: input, shape index: {}]   ;;  %s408_s2 = inlined_call_operand.vmem [shape: f32[2,1,32], index: 2, kind: input, shape index: {}]   ;;  %s409_s3 = inlined_call_operand.vmem [shape: f32[2,8,32], index: 3, kind: output, shape index: {}]  }
   0x1 LB: > { %s314_s13 = sadd.s32 4294967295, %s356_s12   ;;  %p318_p0 = scmp.ge.s32.totalorder %s356_s12, 1  ;;  %s356_s12 = sphi %s380_s12, %s13_s12  }
   0x2   : > { %p144_p1 = scmp.lt.s32.totalorder %s356_s12, 3 }
   0x4   : > { %p145_p2 = pnand %p318_p0, %p144_p1 }
   0x5   : > { %v348_v0 = vld [vmem:[%s407_s1] sm:$0xff] (!%p145_p2)   ;;  %v358_v1 = vmov (!%p145_p2), 0.0   ;;  %v349_v2 = vld [vmem:[%s407_s1 + $0x8] ss:$0 sps:$4 sm:$0x11] (!%p145_p2)   ;;  %vm206_vm0 = vcmask (!%p145_p2), 1040384  }
   0x6   : > { %148 = sbr.rel (%p145_p2) target bundleno = 234 (0xea), region = 32  ;;  %330 = vmatprep.subr.bf16.mxu0 (!%p145_p2), %v358_v1  ;;  %p169_p3 = scmp.lt.s32.totalorder (!%p145_p2), %s314_s13, 1  ;;  %v208_v3 = vsel (!%p145_p2), %vm206_vm0, %v349_v2, 0  ;;  %vm359_vm1 = vmmov (!%p145_p2), 0   ;;  %vm202_vm2 = vcmask (!%p145_p2), 146432   ;;  %vm250_vm3 = vcmask (!%p145_p2), 261120  }
   0x7   : > { %331 = vmatpush3.bf16.msra.mxu0 (!%p145_p2), %v348_v0  ;;  %334 = vmatprep.mubr.msk.bf16.mxu0 (!%p145_p2), %vm359_vm1, %v358_v1 }
   0x8   : > { %332 = vmatprep.subr.bf16.mxu0 (!%p145_p2), %v358_v1 }
   0xb   : > { %333 = vmatpush3.bf16.msra.mxu0 (!%p145_p2), %v208_v3 }
   0xd   : > { %s411_s13 = smov (!%p169_p3, %s314_s13), 1 }
   0xe   : > { %s319_s18 = sshll.u32 %s411_s13, 3  ;;  %s175_s24 = scalar_lea.vmem %s408_s2, %s411_s13 }
   0xf   : > { %s172_s21 = scalar_lea.vmem %s406_s0, %s319_s18  ;;  %v321_v6 = vld [vmem:[%s175_s24] ss:$0 sm:$0xff]  ;;  %s179_s27 = scalar_lea.vmem %s409_s3, %s319_s18 }
  0x10   : > { %v181_v4 = vld [vmem:[%s172_s21] sm:$0xff] }
  0x11   : > { %v182_v5 = vpack.c.bf16 %v181_v4, %v181_v4 }
  0x13   : > { %335 = vmatmul.mubr.msk.bf16.vlgmr.msra.gmra.mrb[0].mxu0 %vm202_vm2, %v182_v5 }
  0xe6   : > { %v244_v7 = vpop.f32.mrb[0].mxu0 }
  0xe7   : > { %v245_v8 = vadd.f32 %v321_v6, %v244_v7  ;;  %v336_v9 = vpop.f32.mrb[1].mxu0 }
  0xe8   : > { %v247_v10 = vpop.f32.mrb[2].mxu0 }
  0xe9   : > { %251 = vst.msk [vmem:[%s179_s27] sm:$0xff] %vm250_vm3, %v245_v8  ;;  %v337_v11 = vpop.f32.mrb[3].mxu0 }
  0xea PF: > { %s13_s12 = sadd.s32 1, %s356_s12  }
  0xeb   : > { %p10_p4 = scmp.ge.s32.totalorder %s13_s12, 4  }
  0xed   :  { %12 = sbr.rel (!%p10_p4) target bundleno = 1 (0x1), region = 65 }

// kernel: pose_fsq_autoencoder_forward.13
= control target key start
LH: loop header
LB: loop body
LE: loop exit
PB: predicated region body
PF: predicated region fallthrough
CT: control target
= control target key end

     0   :  { %s357_s12 = smov 0   ;;  %s383_s0 = inlined_call_operand.vmem [shape: f32[2,8,32], index: 0, kind: input, shape index: {}]   ;;  %s384_s1 = inlined_call_operand.vmem [shape: bf16[32,18], index: 1, kind: input, shape index: {}]   ;;  %s385_s2 = inlined_call_operand.vmem [shape: f32[1,18], index: 2, kind: input, shape index: {}]   ;;  %s386_s3 = inlined_call_operand.vmem [shape: f32[2,8,18], index: 3, kind: output, shape index: {}]  }
   0x1 LB: > { %s291_s13 = sadd.s32 4294967295, %s333_s12   ;;  %p295_p0 = scmp.ge.s32.totalorder %s333_s12, 1  ;;  %s333_s12 = sphi %s357_s12, %s13_s12  }
   0x2   : > { %p136_p1 = scmp.lt.s32.totalorder %s333_s12, 3 }
   0x4   : > { %p137_p2 = pnand %p295_p0, %p136_p1 }
   0x5   : > { %v325_v0 = vld [vmem:[%s384_s1] sm:$0xff] (!%p137_p2)   ;;  %v335_v1 = vmov (!%p137_p2), 0.0   ;;  %v326_v2 = vld [vmem:[%s384_s1 + $0x8] sm:$0xff] (!%p137_p2)   ;;  %vm336_vm0 = vmmov (!%p137_p2), 0   ;;  %p158_p3 = scmp.lt.s32.totalorder (!%p137_p2), %s291_s13, 1  ;;  %vm192_vm1 = vcmask (!%p137_p2), 261120  }
   0x6   : > { %140 = sbr.rel (%p137_p2) target bundleno = 234 (0xea), region = 32  ;;  %307 = vmatprep.subr.bf16.mxu0 (!%p137_p2), %v335_v1  ;;  %311 = vmatprep.mubr.msk.bf16.mxu0 (!%p137_p2), %vm336_vm0, %v335_v1  ;;  %v298_v5 = vld [vmem:[%s385_s2] ss:$0 sm:$0xff] (!%p137_p2)  ;;  %vm236_vm2 = vcmask (!%p137_p2), 146432  }
   0x7   : > { %308 = vmatpush3.bf16.msra.mxu0 (!%p137_p2), %v325_v0 }
   0x8   : > { %309 = vmatprep.subr.bf16.mxu0 (!%p137_p2), %v335_v1 }
   0xb   : > { %310 = vmatpush3.bf16.msra.mxu0 (!%p137_p2), %v326_v2 }
   0xd   : > { %s388_s13 = smov (!%p158_p3, %s291_s13), 1 }
   0xe   : > { %s296_s18 = sshll.u32 %s388_s13, 3 }
   0xf   : > { %s161_s21 = scalar_lea.vmem %s383_s0, %s296_s18  ;;  %s165_s26 = scalar_lea.vmem %s386_s3, %s296_s18 }
  0x10   : > { %v167_v3 = vld [vmem:[%s161_s21] sm:$0xff] }
  0x11   : > { %v168_v4 = vpack.c.bf16 %v167_v3, %v167_v3 }
  0x13   : > { %312 = vmatmul.mubr.msk.bf16.vlgmr.msra.gmra.mrb[0].mxu0 %vm192_vm1, %v168_v4 }
  0xe6   : > { %v230_v6 = vpop.f32.mrb[0].mxu0 }
  0xe7   : > { %v231_v7 = vadd.f32 %v298_v5, %v230_v6  ;;  %v313_v8 = vpop.f32.mrb[1].mxu0 }
  0xe8   : > { %v233_v9 = vpop.f32.mrb[2].mxu0 }
  0xe9   : > { %237 = vst.msk [vmem:[%s165_s26] sm:$0xff] %vm236_vm2, %v231_v7  ;;  %v314_v10 = vpop.f32.mrb[3].mxu0 }
  0xea PF: > { %s13_s12 = sadd.s32 1, %s333_s12  }
  0xeb   : > { %p10_p4 = scmp.ge.s32.totalorder %s13_s12, 4  }
  0xed   :  { %12 = sbr.rel (!%p10_p4) target bundleno = 1 (0x1), region = 62 }

// kernel: pose_fsq_autoencoder_forward.10
= control target key start
LH: loop header
LB: loop body
LE: loop exit
PB: predicated region body
PF: predicated region fallthrough
CT: control target
= control target key end

     0   :  { %s880_s21 = smov 0   ;;  %s949_s0 = inlined_call_operand.vmem [shape: f32[2,8,32], index: 0, kind: input, shape index: {}]   ;;  %s950_s1 = inlined_call_operand.vmem [shape: bf16[32,8], index: 1, kind: input, shape index: {}]   ;;  %s951_s2 = inlined_call_operand.vmem [shape: f32[1,8], index: 2, kind: input, shape index: {}]   ;;  %s952_s3 = inlined_call_operand.vmem [shape: bf16[8,32], index: 3, kind: input, shape index: {}]   ;;  %s953_s4 = inlined_call_operand.vmem [shape: f32[1,32], index: 4, kind: input, shape index: {}]   ;;  %s954_s5 = inlined_call_operand.vmem [shape: f32[1,8], index: 5, kind: input, shape index: {}]   ;;  %s955_s6 = inlined_call_operand.vmem [shape: f32[1,8], index: 6, kind: input, shape index: {}]   ;;  %s956_s7 = inlined_call_operand.vmem [shape: f32[1,8], index: 7, kind: input, shape index: {}]   ;;  %s957_s8 = inlined_call_operand.vmem [shape: f32[1,8], index: 8, kind: input, shape index: {}]   ;;  %s958_s9 = inlined_call_operand.vmem [shape: f32[1,8], index: 9, kind: input, shape index: {}]   ;;  %s959_s10 = inlined_call_operand.vmem [shape: f32[2,1,32], index: 10, kind: input, shape index: {}]   ;;  %s960_s11 = inlined_call_operand.vmem [shape: f32[2,8,32], index: 11, kind: output, shape index: {0}]   ;;  %s961_s12 = inlined_call_operand.vmem [shape: s32[2,8,4], index: 12, kind: output, shape index: {1}]  }
   0x1 LB: > { %s738_s22 = sadd.s32 4294967295, %s808_s21   ;;  %p742_p0 = scmp.ge.s32.totalorder %s808_s21, 1  ;;  %s808_s21 = sphi %s880_s21, %s23_s21  }
   0x2   : > { %p372_p1 = scmp.lt.s32.totalorder %s808_s21, 3 }
   0x4   : > { %p373_p2 = pnand %p742_p0, %p372_p1 }
   0x5   : > { %v796_v0 = vld [vmem:[%s950_s1] sm:$0xff] (!%p373_p2)   ;;  %v810_v1 = vmov (!%p373_p2), 0.0   ;;  %v797_v2 = vld [vmem:[%s950_s1 + $0x8] sm:$0xff] (!%p373_p2)   ;;  %vm811_vm0 = vmmov (!%p373_p2), 0   ;;  %p419_p3 = scmp.lt.s32.totalorder (!%p373_p2), %s738_s22, 1  ;;  %vm460_vm1 = vcmask (!%p373_p2), 261120  }
   0x6   : > { %376 = sbr.rel (%p373_p2) target bundleno = 523 (0x20b), region = 64  ;;  %765 = vmatprep.subr.bf16.mxu0 (!%p373_p2), %v810_v1  ;;  %773 = vmatprep.subr.bf16.mxu1 (!%p373_p2), %v810_v1  ;;  %v580_v5 = vld [vmem:[%s952_s3] sm:$0xf] (!%p373_p2)  ;;  %vm592_vm2 = vcmask (!%p373_p2), 1043456   ;;  %vm588_vm3 = vcmask (!%p373_p2), 64512   ;;  %s813_s13 = smov (!%p373_p2), 126  }
   0x7   : > { %766 = vmatpush3.bf16.msra.mxu0 (!%p373_p2), %v796_v0  ;;  %769 = vmatprep.mubr.msk.bf16.mxu0 (!%p373_p2), %vm811_vm0, %v810_v1  ;;  %v594_v6 = vsel (!%p373_p2), %vm592_vm2, %v580_v5, 0  ;;  %v746_v7 = vld [vmem:[%s951_s2] ss:$0 sm:$0xff] (!%p373_p2)  ;;  %s814_s14 = smov (!%p373_p2), 124   ;;  %vm548_vm4 = vcmask (!%p373_p2), 15360   ;;  %vm571_vm5 = vcmask (!%p373_p2), 7168  }
   0x8   : > { %767 = vmatprep.subr.bf16.mxu0 (!%p373_p2), %v810_v1  ;;  %775 = vmatprep.mubr.msk.bf16.mxu1 (!%p373_p2), %vm811_vm0, %v810_v1  ;;  %v750_v9 = vld [vmem:[%s956_s7] ss:$0 sm:$0xff] (!%p373_p2)  ;;  %vm574_vm6 = vcmask (!%p373_p2), 23552   ;;  %vm577_vm7 = vcmask (!%p373_p2), 31744  }
   0x9   : > { %774 = vmatpush3.bf16.msra.mxu1 (!%p373_p2), %v594_v6  ;;  %v753_v15 = vld [vmem:[%s957_s8] ss:$0 sm:$0xff] (!%p373_p2) }
   0xa   : > { %v751_v16 = vld [vmem:[%s954_s5] ss:$0 sm:$0xff] (!%p373_p2) }
   0xb   : > { %768 = vmatpush3.bf16.msra.mxu0 (!%p373_p2), %v797_v2  ;;  %v752_v18 = vld [vmem:[%s955_s6] ss:$0 sm:$0xff] (!%p373_p2) }
   0xc   : > { %v754_v23 = vld [vmem:[%s958_s9] ss:$0 sm:$0xff] (!%p373_p2) }
   0xd   : > { %s963_s22 = smov (!%p419_p3, %s738_s22), 1  ;;  %v755_v35 = vld [vmem:[%s953_s4] ss:$0 sm:$0xff] }
   0xe   : > { %s897_s27 = sshll.u32 %s963_s22, 3  ;;  %s425_s17 = scalar_lea.vmem %s959_s10, %s963_s22 }
   0xf   : > { %s422_s30 = scalar_lea.vmem %s949_s0, %s897_s27  ;;  %v757_v37 = vld [vmem:[%s425_s17] ss:$0 sm:$0xff]  ;;  %s429_s24 = scalar_lea.vmem %s960_s11, %s897_s27 }
  0x10   : > { %v435_v3 = vld [vmem:[%s422_s30] sm:$0xff]  ;;  %s812_s30 = smov 122   ;;  %s433_s26 = scalar_lea.vmem %s961_s12, %s897_s27 }
  0x11   : > { %v436_v4 = vpack.c.bf16 %v435_v3, %v435_v3 }
  0x13   : > { %770 = vmatmul.mubr.msk.bf16.vlgmr.msra.gmra.mrb[0].mxu0 %vm460_vm1, %v436_v4 }
  0xe6   : > { %v498_v8 = vpop.f32.mrb[0].mxu0 }
  0xe7   : > { %v499_v10 = vadd.f32 %v746_v7, %v498_v8  ;;  %v771_v11 = vpop.f32.mrb[1].mxu0 }
  0xe8   : > { %v501_v12 = vpop.f32.mrb[2].mxu0 }
  0xe9   : > { %v511_v13 = vadd.f32 %v750_v9, %v499_v10  ;;  %v772_v14 = vpop.f32.mrb[3].mxu0 }
  0xeb   : > { %798 = vtanh.f32 %v511_v13 }
  0xec   : > { %800 = vrcp.f32 %v753_v15 }
  0xf5   : > { %v799_v17 = vpop.eup %798 }
  0xf6   : > { %v520_v19 = vmul.f32 %v799_v17, %v751_v16  ;;  %v801_v21 = vpop.eup %800 }
  0xf8   : > { %v528_v20 = vsub.f32 %v520_v19, %v752_v18 }
  0xfa   : > { %v779_v22 = vround.rtne.f32 %v528_v20 }
  0xfc   : > { %v539_v24 = vadd.f32 %v779_v22, %v753_v15  ;;  %v538_v25 = vmul.f32 %v801_v21, %v779_v22 }
  0xfe   : > { %v547_v26 = vmul.f32 %v754_v23, %v539_v24  ;;  %v579_v27 = vpack.c.bf16 %v538_v25, %v538_v25 }
 0x100   : > { %565 = vrot.lane.b32.xlu1 %v547_v26, %s812_s30  ;;  %553 = vrot.lane.b32.xlu0 %v547_v26, %s813_s13  ;;  %v549_v28 = vsel %vm548_vm4, %v547_v26, 0.0 }
 0x101   : > { %776 = vmatmul.mubr.msk.bf16.vlgmr.msra.gmra.mrb[0].mxu1 %vm588_vm3, %v579_v27 }
 0x104   : > { %559 = vrot.lane.b32.xlu0 %v547_v26, %s814_s14 }
 0x124   : > { %550 = vadd.xlane.f32.xlu1 %v549_v28 }
 0x172   : > { %v566_v29 = vpop.permute.xlu1 %565  ;;  %v554_v30 = vpop.permute.xlu0 %553 }
 0x173   : > { %v556_v31 = vsel %vm548_vm4, %v554_v30, 0.0  ;;  %v568_v32 = vsel %vm548_vm4, %v566_v29, 0.0 }
 0x174   : > { %557 = vadd.xlane.f32.xlu0 %v556_v31  ;;  %569 = vadd.xlane.f32.xlu1 %v568_v32 }
 0x176   : > { %v560_v33 = vpop.permute.xlu0 %559 }
 0x177   : > { %v562_v34 = vsel %vm548_vm4, %v560_v33, 0.0 }
 0x178   : > { %563 = vadd.xlane.f32.xlu0 %v562_v34 }
 0x1b1   : > { %v551_v44 = vpop.xlane.xlu1 %550 }
 0x1d4   : > { %v630_v36 = vpop.f32.mrb[0].mxu1 }
 0x1d5   : > { %v631_v38 = vadd.f32 %v755_v35, %v630_v36  ;;  %v777_v39 = vpop.f32.mrb[1].mxu1 }
 0x1d6   : > { %v633_v40 = vpop.f32.mrb[2].mxu1 }
 0x1d7   : > { %v643_v41 = vadd.f32 %v757_v37, %v631_v38  ;;  %v778_v42 = vpop.f32.mrb[3].mxu1 }
 0x1d9   : > { %644 = vst.msk [vmem:[%s429_s24] sm:$0xff] %vm460_vm1, %v643_v41 }
 0x201   : > { %v558_v43 = vpop.xlane.xlu0 %557  ;;  %v570_v47 = vpop.xlane.xlu1 %569 }
 0x202   : > { %v572_v45 = vsel %vm571_vm5, %v551_v44, %v558_v43 }
 0x205   : > { %v564_v46 = vpop.xlane.xlu0 %563 }
 0x206   : > { %v573_v48 = vsel %vm548_vm4, %v572_v45, %v564_v46 }
 0x207   : > { %v575_v49 = vsel %vm574_vm6, %v573_v48, %v570_v47 }
 0x208   : > { %v782_v50 = vcvt.f32.s32 %v575_v49 }
 0x20a   : > { %578 = vst.msk [vmem:[%s433_s26] sm:$0xff] %vm577_vm7, %v782_v50 }
 0x20b PF: > { %s23_s21 = sadd.s32 1, %s808_s21  }
 0x20c   : > { %p20_p4 = scmp.ge.s32.totalorder %s23_s21, 4  }
 0x20e   :  { %22 = sbr.rel (!%p20_p4) target bundleno = 1 (0x1), region = 109 }

// kernel: pose_fsq_autoencoder_forward.8
= control target key start
LH: loop header
LB: loop body
LE: loop exit
PB: predicated region body
PF: predicated region fallthrough
CT: control target
= control target key end

     0   :  { %s1604_s25 = smov 0   ;;  %s1776_s0 = inlined_call_operand.vmem [shape: f32[2,8,32], index: 0, kind: input, shape index: {}]   ;;  %s1777_s1 = inlined_call_operand.vmem [shape: bf16[32,96], index: 1, kind: input, shape index: {}]   ;;  %s1778_s2 = inlined_call_operand.vmem [shape: f32[1,96], index: 2, kind: input, shape index: {}]   ;;  %s1779_s3 = inlined_call_operand.vmem [shape: bf16[32,32], index: 3, kind: input, shape index: {}]   ;;  %s1780_s4 = inlined_call_operand.vmem [shape: f32[1,32], index: 4, kind: input, shape index: {}]   ;;  %s1781_s5 = inlined_call_operand.vmem [shape: f32[1,32], index: 5, kind: input, shape index: {}]   ;;  %s1782_s6 = inlined_call_operand.vmem [shape: f32[1,32], index: 6, kind: input, shape index: {}]   ;;  %s1783_s7 = inlined_call_operand.vmem [shape: bf16[32,64], index: 7, kind: input, shape index: {}]   ;;  %s1784_s8 = inlined_call_operand.vmem [shape: f32[1,64], index: 8, kind: input, shape index: {}]   ;;  %s1785_s9 = inlined_call_operand.vmem [shape: bf16[64,32], index: 9, kind: input, shape index: {}]   ;;  %s1786_s10 = inlined_call_operand.vmem [shape: f32[1,32], index: 10, kind: input, shape index: {}]   ;;  %s1787_s11 = inlined_call_operand.vmem [shape: f32[1,32], index: 11, kind: input, shape index: {}]   ;;  %s1788_s12 = inlined_call_operand.vmem [shape: f32[1,32], index: 12, kind: input, shape index: {}]   ;;  %s1789_s13 = inlined_call_operand.vmem [shape: f32[2,8,32], index: 13, kind: output, shape index: {}]  }
   0x1 LB: > { %s1303_s26 = sadd.s32 4294967295, %s1516_s25   ;;  %p1307_p0 = scmp.ge.s32.totalorder %s1516_s25, 1  ;;  %s1516_s25 = sphi %s1604_s25, %s23_s25  }
   0x2   : > { %p386_p1 = scmp.lt.s32.totalorder %s1516_s25, 3 }
   0x4   : > { %p387_p2 = pnand %p1307_p0, %p386_p1 }
   0x5   : > { %v1480_v0 = vld [vmem:[%s1777_s1] sm:$0xff] (!%p387_p2)   ;;  %v1518_v1 = vmov (!%p387_p2), 0.0   ;;  %v1481_v2 = vld [vmem:[%s1777_s1 + $0x8] sm:$0xff] (!%p387_p2)   ;;  %vm1519_vm0 = vmmov (!%p387_p2), 0   ;;  %p428_p3 = scmp.lt.s32.totalorder (!%p387_p2), %s1303_s26, 1  ;;  %vm462_vm1 = vcmask (!%p387_p2), 261120  }
   0x6   : > { %390 = sbr.rel (%p387_p2) target bundleno = 2559 (0x9ff), region = 72  ;;  %1372 = vmatprep.subr.bf16.mxu0 (!%p387_p2), %v1518_v1  ;;  %1380 = vmatprep.subr.bf16.mxu1 (!%p387_p2), %v1518_v1  ;;  %v1310_v5 = vld [vmem:[%s1778_s2] ss:$0 sm:$0xff] (!%p387_p2)  ;;  %s1520_s20 = smov (!%p387_p2), 120   ;;  %vm510_vm2 = vcmask (!%p387_p2), 64512   ;;  %vm575_vm3 = vcmask (!%p387_p2), 1043456  }
   0x7   : > { %1373 = vmatpush3.bf16.msra.mxu0 (!%p387_p2), %v1480_v0  ;;  %1376 = vmatprep.mubr.msk.bf16.mxu0 (!%p387_p2), %vm1519_vm0, %v1518_v1  ;;  %s1521_s21 = smov (!%p387_p2), 96   ;;  %s1522_s22 = smov (!%p387_p2), 80   ;;  %vm965_vm4 = vcmask (!%p387_p2), 130048   ;;  %vm967_vm5 = vcmask (!%p387_p2), 195584   ;;  %vm1175_vm6 = vcmask (!%p387_p2), 523264  }
   0x8   : > { %1374 = vmatprep.subr.bf16.mxu0 (!%p387_p2), %v1518_v1  ;;  %1382 = vmatprep.mubr.msk.bf16.mxu1 (!%p387_p2), %vm1519_vm0, %v1518_v1  ;;  %s1523_s23 = smov (!%p387_p2), 88   ;;  %s1524_s24 = smov (!%p387_p2), 72  }
   0x9   : > { %s1525_s27 = smov (!%p387_p2), 112   ;;  %s1526_s28 = smov (!%p387_p2), 104  }
   0xa   : > { %s1527_s29 = smov (!%p387_p2), 56   ;;  %s1528_s30 = smov (!%p387_p2), 64  }
   0xb   : > { %1375 = vmatpush3.bf16.msra.mxu0 (!%p387_p2), %v1481_v2  ;;  %s1529_s15 = smov (!%p387_p2), 40   ;;  %s1530_s16 = smov (!%p387_p2), 48  }
   0xc   : > { %1386 = vmatprep.subr.bf16.mxu0 (!%p387_p2), %v1518_v1 }
   0xd   : > { %s1791_s26 = smov (!%p428_p3, %s1303_s26), 1 }
   0xe   : > { %s1308_s14 = sshll.u32 %s1791_s26, 3 }
   0xf   : > { %s431_s17 = scalar_lea.vmem %s1776_s0, %s1308_s14 }
  0x10   : > { %v1634_v3 = vld [vmem:[%s431_s17] sm:$0xff]  ;;  %s1531_s17 = smov 8  }
  0x11   : > { %v438_v4 = vpack.c.bf16 %v1634_v3, %v1634_v3 }
  0x13   : > { %1377 = vmatmul.mubr.msk.bf16.vlgmr.msra.gmra.mrb[0].mxu0 %vm462_vm1, %v438_v4 }
  0x14   : > { %1388 = vmatprep.mubr.msk.bf16.mxu0 %vm1519_vm0, %v1518_v1 }
  0xe6   : > { %v500_v6 = vpop.f32.mrb[0].mxu0 }
  0xe7   : > { %v501_v7 = vadd.f32 %v1310_v5, %v500_v6  ;;  %v1378_v8 = vpop.f32.mrb[1].mxu0 }
  0xe8   : > { %v503_v9 = vpop.f32.mrb[2].mxu0 }
  0xe9   : > { %v1644_v10 = vpack.c.bf16 %v501_v7, %v501_v7  ;;  %v1379_v11 = vpop.f32.mrb[3].mxu0 }
  0xeb   : > { %619 = vrot.lane.b32.xlu1 %v1644_v10, %s1520_s20  ;;  %508 = vrot.lane.b32.xlu0 %v1644_v10, %s1521_s21 }
  0xef   : > { %732 = vrot.lane.b32.xlu1 %v1644_v10, %s1522_s22  ;;  %621 = vrot.lane.b32.xlu0 %v1644_v10, %s1523_s23  ;;  %s1532_s22 = smov 16   ;;  %s1533_s23 = smov 24  }
  0xf3   : > { %843 = vrot.lane.b32.xlu1 %v1644_v10, %s1524_s24  ;;  %730 = vrot.lane.b32.xlu0 %v1644_v10, %s1525_s27  ;;  %s435_s24 = scalar_lea.vmem %s1789_s13, %s1308_s14 }
  0xf7   : > { %841 = vrot.lane.b32.xlu0 %v1644_v10, %s1526_s28 }
 0x15d   : > { %v509_v12 = vpop.permute.xlu0 %508  ;;  %v620_v15 = vpop.permute.xlu1 %619 }
 0x15e   : > { %v515_v13 = vsel %vm510_vm2, %v509_v12, 0 }
 0x15f   : > { %1381 = vmatpush3.bf16.xpose.msra.mxu1 %v515_v13 }
 0x160   : > { %1392 = vmatprep.subr.bf16.mxu1 %v1518_v1 }
 0x161   : > { %v622_v14 = vpop.permute.xlu0 %621  ;;  %v733_v17 = vpop.permute.xlu1 %732 }
 0x162   : > { %v627_v16 = vsel %vm510_vm2, %v622_v14, 0  ;;  %v738_v18 = vsel %vm510_vm2, %v733_v17, 0 }
 0x165   : > { %v844_v19 = vpop.permute.xlu1 %843  ;;  %v731_v20 = vpop.permute.xlu0 %730 }
 0x166   : > { %1383 = vmatmul.mubr.msk.bf16.vlgmr.msra.gmra.mrb[0].mxu1 %vm510_vm2, %v1644_v10  ;;  %v849_v21 = vsel %vm510_vm2, %v844_v19, 0 }
 0x167   : > { %1393 = vmatpush3.bf16.xpose.msra.mxu1 %v627_v16  ;;  %1394 = vmatprep.mubr.msk.bf16.mxu1 %vm1519_vm0, %v1518_v1 }
 0x168   : > { %1404 = vmatprep.subr.bf16.mxu1 %v1518_v1 }
 0x169   : > { %v842_v22 = vpop.permute.xlu0 %841 }
 0x16e   : > { %1395 = vmatmul.mubr.msk.bf16.vlgmr.msra.gmra.mrb[4].mxu1 %vm510_vm2, %v620_v15 }
 0x16f   : > { %1405 = vmatpush3.bf16.xpose.msra.mxu1 %v738_v18  ;;  %1406 = vmatprep.mubr.msk.bf16.mxu1 %vm1519_vm0, %v1518_v1 }
 0x170   : > { %1416 = vmatprep.subr.bf16.mxu1 %v1518_v1 }
 0x176   : > { %1407 = vmatmul.mubr.msk.bf16.vlgmr.msra.gmra.mrb[8].mxu1 %vm510_vm2, %v731_v20 }
 0x177   : > { %1417 = vmatpush3.bf16.xpose.msra.mxu1 %v849_v21  ;;  %1418 = vmatprep.mubr.msk.bf16.mxu1 %vm1519_vm0, %v1518_v1 }
 0x178   : > { %1428 = vmatprep.subr.bf16.mxu1 %v1518_v1 }
 0x17e   : > { %1419 = vmatmul.mubr.msk.bf16.vlgmr.msra.gmra.mrb[12].mxu1 %vm510_vm2, %v842_v22 }
 0x17f   : > { %1432 = vmatprep.mubr.msk.bf16.mxu1 %vm1519_vm0, %v1518_v1 }
 0x239   : > { %v551_v23 = vpop.f32.mrb[0].mxu1 }
 0x23a   : > { %v557_v24 = vmul.f32 0.35355338, %v551_v23  ;;  %v1384_v25 = vpop.f32.mrb[1].mxu1 }
 0x23b   : > { %v554_v26 = vpop.f32.mrb[2].mxu1 }
 0x23c   : > { %v1385_v27 = vpop.f32.mrb[3].mxu1  ;;  %v558_v28 = vsel %vm510_vm2, %v557_v24, -inf }
 0x23d   : > { %559 = vmax.xlane.f32.xlu1 %v558_v28 }
 0x241   : > { %v663_v29 = vpop.f32.mrb[4].mxu1 }
 0x242   : > { %v669_v30 = vmul.f32 0.35355338, %v663_v29  ;;  %v1396_v31 = vpop.f32.mrb[5].mxu1 }
 0x243   : > { %v666_v32 = vpop.f32.mrb[6].mxu1 }
 0x244   : > { %v1397_v33 = vpop.f32.mrb[7].mxu1  ;;  %v670_v34 = vsel %vm510_vm2, %v669_v30, -inf }
 0x245   : > { %671 = vmax.xlane.f32.xlu0 %v670_v34 }
 0x249   : > { %v774_v35 = vpop.f32.mrb[8].mxu1 }
 0x24a   : > { %v780_v36 = vmul.f32 0.35355338, %v774_v35  ;;  %v1408_v37 = vpop.f32.mrb[9].mxu1 }
 0x24b   : > { %v777_v38 = vpop.f32.mrb[10].mxu1  ;;  %v1482_v37 = vld [vmem:[%s1779_s3] sm:$0xff]  }
 0x24c   : > { %v1409_v39 = vpop.f32.mrb[11].mxu1  ;;  %v781_v40 = vsel %vm510_vm2, %v780_v36, -inf  ;;  %1429 = vmatpush3.bf16.msra.mxu1 %v1482_v37  ;;  %v1483_v38 = vld [vmem:[%s1779_s3 + $0x8] sm:$0xff]  }
 0x24d   : > { %782 = vmax.xlane.f32.xlu0 %v781_v40  ;;  %1430 = vmatprep.subr.bf16.mxu1 %v1518_v1 }
 0x250   : > { %1431 = vmatpush3.bf16.msra.mxu1 %v1483_v38 }
 0x251   : > { %v885_v41 = vpop.f32.mrb[12].mxu1  ;;  %1444 = vmatprep.subr.bf16.mxu1 %v1518_v1 }
 0x252   : > { %v891_v42 = vmul.f32 0.35355338, %v885_v41  ;;  %v1420_v43 = vpop.f32.mrb[13].mxu1 }
 0x253   : > { %v888_v44 = vpop.f32.mrb[14].mxu1 }
 0x254   : > { %v1421_v45 = vpop.f32.mrb[15].mxu1  ;;  %v892_v46 = vsel %vm510_vm2, %v891_v42, -inf }
 0x255   : > { %893 = vmax.xlane.f32.xlu1 %v892_v46 }
 0x2ca   : > { %v560_v47 = vpop.xlane.xlu1 %559 }
 0x2cb   : > { %v561_v48 = vsub.f32 %v557_v24, %v560_v47 }
 0x2cd   : > { %v562_v49 = vmul.f32 1.442695, %v561_v48 }
 0x2cf   : > { %1490 = vpow2.f32 %v562_v49 }
 0x2d2   : > { %v672_v50 = vpop.xlane.xlu0 %671 }
 0x2d3   : > { %v673_v51 = vsub.f32 %v669_v30, %v672_v50 }
 0x2d5   : > { %v674_v52 = vmul.f32 1.442695, %v673_v51 }
 0x2d7   : > { %1492 = vpow2.f32 %v674_v52 }
 0x2d9   : > { %v1491_v53 = vpop.eup %1490 }
 0x2da   : > { %v783_v54 = vpop.xlane.xlu0 %782  ;;  %v564_v55 = vsel %vm510_vm2, %v1491_v53, 0.0 }
 0x2db   : > { %v784_v56 = vsub.f32 %v780_v36, %v783_v54  ;;  %565 = vadd.xlane.f32.xlu0 %v564_v55  ;;  %v1322_v54 = vld [vmem:[%s1780_s4] ss:$0 sm:$0xff] }
 0x2dd   : > { %v785_v57 = vmul.f32 1.442695, %v784_v56 }
 0x2df   : > { %1494 = vpow2.f32 %v785_v57 }
 0x2e1   : > { %v1493_v58 = vpop.eup %1492 }
 0x2e2   : > { %v676_v59 = vsel %vm510_vm2, %v1493_v58, 0.0  ;;  %v894_v62 = vpop.xlane.xlu1 %893 }
 0x2e3   : > { %677 = vadd.xlane.f32.xlu1 %v676_v59  ;;  %v895_v63 = vsub.f32 %v891_v42, %v894_v62 }
 0x2e5   : > { %v896_v0 = vmul.f32 1.442695, %v895_v63 }
 0x2e7   : > { %1496 = vpow2.f32 %v896_v0 }
 0x2e9   : > { %v1495_v60 = vpop.eup %1494 }
 0x2ea   : > { %v787_v61 = vsel %vm510_vm2, %v1495_v60, 0.0 }
 0x2eb   : > { %788 = vadd.xlane.f32.xlu0 %v787_v61 }
 0x2f1   : > { %v1497_v2 = vpop.eup %1496 }
 0x2f2   : > { %v898_v4 = vsel %vm510_vm2, %v1497_v2, 0.0 }
 0x2f4   : > { %682 = vrot.lane.b32.xlu1 %v1644_v10, %s1527_s29 }
 0x301   : > { %570 = vrot.lane.b32.xlu0 %v1644_v10, %s1528_s30 }
 0x305   : > { %904 = vrot.lane.b32.xlu0 %v1644_v10, %s1529_s15 }
 0x318   : > { %899 = vadd.xlane.f32.xlu1 %v898_v4 }
 0x329   : > { %793 = vrot.lane.b32.xlu1 %v1644_v10, %s1530_s16 }
 0x368   : > { %v566_v5 = vpop.xlane.xlu0 %565 }
 0x369   : > { %1498 = vrcp.f32 %v566_v5  ;;  %v1484_v5 = vld [vmem:[%s1783_s7] sm:$0xff]  }
 0x370   : > { %v678_v6 = vpop.xlane.xlu1 %677 }
 0x371   : > { %1500 = vrcp.f32 %v678_v6  ;;  %v1486_v6 = vld [vmem:[%s1785_s9] sm:$0xff]  }
 0x373   : > { %v1499_v7 = vpop.eup %1498 }
 0x374   : > { %v568_v9 = vmul.f32 %v1499_v7, %v1491_v53  ;;  %v683_v13 = vpop.permute.xlu1 %682  ;;  %v1487_v7 = vld [vmem:[%s1785_s9 + $0x8] sm:$0xff]  }
 0x375   : > { %v688_v16 = vsel %vm575_vm3, %v683_v13, 0  ;;  %v1326_v13 = vld [vmem:[%s1781_s5] ss:$0 sm:$0xff] }
 0x376   : > { %v569_v14 = vpack.c.bf16 %v568_v9, %v568_v9 }
 0x378   : > { %v789_v8 = vpop.xlane.xlu0 %788 }
 0x379   : > { %1502 = vrcp.f32 %v789_v8 }
 0x37b   : > { %v1501_v15 = vpop.eup %1500 }
 0x37c   : > { %v571_v11 = vpop.permute.xlu0 %570  ;;  %v680_v10 = vmul.f32 %v1501_v15, %v1493_v58  ;;  %v1327_v15 = vld [vmem:[%s1782_s6] ss:$0 sm:$0xff] }
 0x37d   : > { %v577_v12 = vsel %vm575_vm3, %v571_v11, 0 }
 0x37e   : > { %1387 = vmatpush3.bf16.msra.mxu0 %v577_v12  ;;  %v681_v17 = vpack.c.bf16 %v680_v10, %v680_v10 }
 0x37f   : > { %1398 = vmatprep.subr.bf16.mxu0 %v1518_v1 }
 0x380   : > { %v905_v23 = vpop.permute.xlu0 %904 }
 0x381   : > { %1389 = vmatmul.mubr.msk.bf16.vlgmr.msra.gmra.mrb[4].mxu0 %vm510_vm2, %v569_v14  ;;  %v910_v25 = vsel %vm575_vm3, %v905_v23, 0 }
 0x382   : > { %1399 = vmatpush3.bf16.msra.mxu0 %v688_v16  ;;  %1400 = vmatprep.mubr.msk.bf16.mxu0 %vm1519_vm0, %v1518_v1 }
 0x383   : > { %1410 = vmatprep.subr.bf16.mxu0 %v1518_v1  ;;  %v1503_v18 = vpop.eup %1502 }
 0x384   : > { %v791_v20 = vmul.f32 %v1503_v18, %v1495_v60  ;;  %v1488_v18 = vld [vmem:[%s1785_s9 + $0x10] sm:$0xff]  }
 0x386   : > { %v792_v24 = vpack.c.bf16 %v791_v20, %v791_v20  ;;  %v1328_v20 = vld [vmem:[%s1784_s8] ss:$0 sm:$0xff] }
 0x389   : > { %1401 = vmatmul.mubr.msk.bf16.vlgmr.msra.gmra.mrb[8].mxu0 %vm510_vm2, %v681_v17 }
 0x38a   : > { %1412 = vmatprep.mubr.msk.bf16.mxu0 %vm1519_vm0, %v1518_v1 }
 0x3a5   : > { %v900_v19 = vpop.xlane.xlu1 %899 }
 0x3a6   : > { %1504 = vrcp.f32 %v900_v19  ;;  %v1489_v19 = vld [vmem:[%s1785_s9 + $0x18] sm:$0xff]  }
 0x3a9   : > { %v794_v21 = vpop.permute.xlu1 %793 }
 0x3aa   : > { %v799_v22 = vsel %vm575_vm3, %v794_v21, 0 }
 0x3ab   : > { %1411 = vmatpush3.bf16.msra.mxu0 %v799_v22 }
 0x3ac   : > { %1422 = vmatprep.subr.bf16.mxu0 %v1518_v1 }
 0x3ae   : > { %1413 = vmatmul.mubr.msk.bf16.vlgmr.msra.gmra.mrb[12].mxu0 %vm510_vm2, %v792_v24 }
 0x3af   : > { %1423 = vmatpush3.bf16.msra.mxu0 %v910_v25  ;;  %1424 = vmatprep.mubr.msk.bf16.mxu0 %vm1519_vm0, %v1518_v1 }
 0x3b0   : > { %v1505_v26 = vpop.eup %1504  ;;  %1436 = vmatprep.subr.bf16.mxu0 %v1518_v1 }
 0x3b1   : > { %v902_v27 = vmul.f32 %v1505_v26, %v1497_v2 }
 0x3b3   : > { %v903_v28 = vpack.c.bf16 %v902_v27, %v902_v27 }
 0x3b6   : > { %1425 = vmatmul.mubr.msk.bf16.vlgmr.msra.gmra.mrb[16].mxu0 %vm510_vm2, %v903_v28 }
 0x3b7   : > { %1440 = vmatprep.mubr.msk.bf16.mxu0 %vm1519_vm0, %v1518_v1  ;;  %1437 = vmatpush3.bf16.msra.mxu0 %v1484_v5 }
 0x3b8   : > { %1438 = vmatprep.subr.bf16.mxu0 %v1518_v1 }
 0x454   : > { %v613_v29 = vpop.f32.mrb[4].mxu0 }
 0x455   : > { %v1390_v30 = vpop.f32.mrb[5].mxu0 }
 0x456   : > { %v616_v31 = vpop.f32.mrb[6].mxu0 }
 0x457   : > { %v1391_v32 = vpop.f32.mrb[7].mxu0 }
 0x45c   : > { %v724_v33 = vpop.f32.mrb[8].mxu0 }
 0x45d   : > { %953 = vrot.lane.b32.xlu1 %v724_v33, %s1531_s17  ;;  %v1402_v34 = vpop.f32.mrb[9].mxu0 }
 0x45e   : > { %v727_v35 = vpop.f32.mrb[10].mxu0 }
 0x45f   : > { %v1403_v36 = vpop.f32.mrb[11].mxu0 }
 0x481   : > { %v835_v39 = vpop.f32.mrb[12].mxu0 }
 0x482   : > { %957 = vrot.lane.b32.xlu0 %v835_v39, %s1532_s22  ;;  %v1414_v40 = vpop.f32.mrb[13].mxu0 }
 0x483   : > { %v838_v41 = vpop.f32.mrb[14].mxu0 }
 0x484   : > { %v1415_v42 = vpop.f32.mrb[15].mxu0 }
 0x489   : > { %v946_v43 = vpop.f32.mrb[16].mxu0 }
 0x48a   : > { %961 = vrot.lane.b32.xlu1 %v946_v43, %s1533_s23  ;;  %v1426_v44 = vpop.f32.mrb[17].mxu0 }
 0x48b   : > { %v949_v45 = vpop.f32.mrb[18].mxu0  ;;  %v1338_v44 = vld [vmem:[%s1787_s11] ss:$0 sm:$0xff] }
 0x48c   : > { %v1427_v46 = vpop.f32.mrb[19].mxu0 }
 0x48d   : > { %v1339_v46 = vld [vmem:[%s1788_s12] ss:$0 sm:$0xff] }
 0x4cf   : > { %v954_v47 = vpop.permute.xlu1 %953 }
 0x4d0   : > { %v964_v49 = vsel %vm510_vm2, %v613_v29, %v954_v47 }
 0x4f4   : > { %v958_v48 = vpop.permute.xlu0 %957 }
 0x4f5   : > { %v966_v50 = vsel %vm965_vm4, %v964_v49, %v958_v48 }
 0x4fc   : > { %v962_v51 = vpop.permute.xlu1 %961 }
 0x4fd   : > { %v968_v52 = vsel %vm967_vm5, %v966_v50, %v962_v51 }
 0x4fe   : > { %v969_v53 = vpack.c.bf16 %v968_v52, %v968_v52 }
 0x500   : > { %1433 = vmatmul.mubr.msk.bf16.vlgmr.msra.gmra.mrb[16].mxu1 %vm462_vm1, %v969_v53 }
 0x501   : > { %1452 = vmatprep.mubr.msk.bf16.mxu1 %vm1519_vm0, %v1518_v1  ;;  %1445 = vmatpush3.bf16.msra.mxu1 %v1486_v6 }
 0x502   : > { %1446 = vmatprep.subr.bf16.mxu1 %v1518_v1 }
 0x505   : > { %1447 = vmatpush3.bf16.msra.mxu1 %v1487_v7 }
 0x506   : > { %1448 = vmatprep.subr.bf16.mxu1 %v1518_v1 }
 0x509   : > { %1449 = vmatpush3.bf16.msra.mxu1 %v1488_v18 }
 0x50a   : > { %1450 = vmatprep.subr.bf16.mxu1 %v1518_v1  ;;  %v1332_v1 = vld [vmem:[%s1786_s10] ss:$0 sm:$0xff] }
 0x50d   : > { %1451 = vmatpush3.bf16.msra.mxu1 %v1489_v19 }
 0x5d3   : > { %v1030_v55 = vpop.f32.mrb[16].mxu1 }
 0x5d4   : > { %v1031_v56 = vadd.f32 %v1322_v54, %v1030_v55  ;;  %v1434_v57 = vpop.f32.mrb[17].mxu1 }
 0x5d5   : > { %v1033_v58 = vpop.f32.mrb[18].mxu1 }
 0x5d6   : > { %v1435_v59 = vpop.f32.mrb[19].mxu1  ;;  %v1036_v60 = vadd.f32 %v1031_v56, %v1634_v3  ;;  %v1485_v3 = vld [vmem:[%s1783_s7 + $0x8] sm:$0xff]  }
 0x5d7   : > { %1439 = vmatpush3.bf16.msra.mxu0 %v1485_v3 }
 0x5d8   : > { %v1039_v61 = vsel %vm462_vm1, %v1036_v60, 0.0 }
 0x5d9   : > { %1040 = vadd.xlane.f32.xlu0 %v1039_v61 }
 0x666   : > { %v1041_v62 = vpop.xlane.xlu0 %1040 }
 0x667   : > { %v1043_v63 = vmul.f32 0.03125, %v1041_v62 }
 0x669   : > { %v1044_v0 = vsub.f32 %v1036_v60, %v1043_v63 }
 0x66b   : > { %v1045_v2 = vmul.f32 %v1044_v0, %v1044_v0 }
 0x66d   : > { %v1046_v4 = vsel %vm462_vm1, %v1045_v2, 0.0 }
 0x66e   : > { %1047 = vadd.xlane.f32.xlu1 %v1046_v4 }
 0x6fb   : > { %v1048_v8 = vpop.xlane.xlu1 %1047 }
 0x6fc   : > { %v1049_v9 = vmul.f32 0.03125, %v1048_v8 }
 0x6fe   : > { %v1050_v11 = vadd.f32 1e-05, %v1049_v9 }
 0x700   : > { %1506 = vrsqrt.f32 %v1050_v11 }
 0x70a   : > { %v1507_v12 = vpop.eup %1506 }
 0x70b   : > { %v1052_v14 = vmul.f32 %v1507_v12, %v1044_v0 }
 0x70d   : > { %v1059_v16 = vmul.f32 %v1326_v13, %v1052_v14 }
 0x70f   : > { %v1066_v10 = vadd.f32 %v1327_v15, %v1059_v16 }
 0x711   : > { %v1067_v17 = vpack.c.bf16 %v1066_v10, %v1066_v10 }
 0x713   : > { %1441 = vmatmul.mubr.msk.bf16.vlgmr.msra.gmra.mrb[20].mxu0 %vm462_vm1, %v1067_v17 }
 0x7e6   : > { %v1128_v21 = vpop.f32.mrb[20].mxu0 }
 0x7e7   : > { %v1129_v22 = vadd.f32 %v1328_v20, %v1128_v21  ;;  %v1442_v23 = vpop.f32.mrb[21].mxu0 }
 0x7e8   : > { %v1131_v24 = vpop.f32.mrb[22].mxu0 }
 0x7e9   : > { %v1134_v25 = vmax.f32 %v1129_v22, 0.0  ;;  %v1443_v26 = vpop.f32.mrb[23].mxu0 }
 0x7eb   : > { %v1135_v27 = vpack.c.bf16 %v1134_v25, %v1134_v25 }
 0x7ed   : > { %1453 = vmatmul.mubr.msk.bf16.vlgmr.msra.gmra.mrb[20].mxu1 %vm1175_vm6, %v1135_v27 }
 0x8c0   : > { %v1213_v28 = vpop.f32.mrb[20].mxu1 }
 0x8c1   : > { %v1214_v29 = vadd.f32 %v1332_v1, %v1213_v28  ;;  %v1454_v30 = vpop.f32.mrb[21].mxu1 }
 0x8c2   : > { %v1216_v31 = vpop.f32.mrb[22].mxu1 }
 0x8c3   : > { %v1455_v32 = vpop.f32.mrb[23].mxu1  ;;  %v1219_v33 = vadd.f32 %v1214_v29, %v1066_v10 }
 0x8c5   : > { %v1222_v34 = vsel %vm462_vm1, %v1219_v33, 0.0 }
 0x8c6   : > { %1223 = vadd.xlane.f32.xlu0 %v1222_v34 }
 0x953   : > { %v1224_v35 = vpop.xlane.xlu0 %1223 }
 0x954   : > { %v1225_v36 = vmul.f32 0.03125, %v1224_v35 }
 0x956   : > { %v1226_v37 = vsub.f32 %v1219_v33, %v1225_v36 }
 0x958   : > { %v1227_v38 = vmul.f32 %v1226_v37, %v1226_v37 }
 0x95a   : > { %v1228_v39 = vsel %vm462_vm1, %v1227_v38, 0.0 }
 0x95b   : > { %1229 = vadd.xlane.f32.xlu0 %v1228_v39 }
 0x9e8   : > { %v1230_v40 = vpop.xlane.xlu0 %1229 }
 0x9e9   : > { %v1231_v41 = vmul.f32 0.03125, %v1230_v40 }
 0x9eb   : > { %v1232_v42 = vadd.f32 1e-05, %v1231_v41 }
 0x9ed   : > { %1508 = vrsqrt.f32 %v1232_v42 }
 0x9f7   : > { %v1509_v43 = vpop.eup %1508 }
 0x9f8   : > { %v1234_v45 = vmul.f32 %v1509_v43, %v1226_v37 }
 0x9fa   : > { %v1241_v47 = vmul.f32 %v1338_v44, %v1234_v45 }
 0x9fc   : > { %v1248_v48 = vadd.f32 %v1339_v46, %v1241_v47 }
 0x9fe   : > { %1249 = vst.msk [vmem:[%s435_s24] sm:$0xff] %vm462_vm1, %v1248_v48 }
 0x9ff PF: > { %s23_s25 = sadd.s32 1, %s1516_s25  }
 0xa00   : > { %p20_p4 = scmp.ge.s32.totalorder %s23_s25, 4  }
 0xa02   :  { %22 = sbr.rel (!%p20_p4) target bundleno = 1 (0x1), region = 102 }

</bundles_post_ra>
